<compile_context>
chip_gen: v7x
topology: tpu7x:2x2x1
jax: 0.10.0
libtpu: 0.0.40
codegen_flags: <defaults>
</compile_context>

<pallas_src>
import functools
import math

import jax
import jax.numpy as jnp
from jax import lax
from jax.experimental import pallas as pl
from jax.experimental.pallas import tpu as pltpu


# Re-derived VMEM budget: <= v7x's 64 MiB physical per TensorCore (v5e/v6e have 128 MiB).
_VMEM_LIMIT_BYTES = 56 * 1024 * 1024


def _ln_qkv_kernel(x_ref, g_ref, b_ref, wqkv_ref, bqkv_ref,
                   xn_ref, q_ref, kT_ref, v_ref):
    """norm_1 + fused QKV projection for one (batch, row-tile) block."""
    D = x_ref.shape[-1]
    inv_sqrt_d = 1.0 / math.sqrt(D)

    x = x_ref[0]                                          # (rtile, D) f32
    mu = jnp.mean(x, axis=-1, keepdims=True)
    xc = x - mu
    var = jnp.mean(xc * xc, axis=-1, keepdims=True)       # two-pass LN stats
    xn = xc * lax.rsqrt(var + 1e-5) * g_ref[0] + b_ref[0]
    xn_bf = xn.astype(jnp.bfloat16)
    xn_ref[0] = xn_bf

    qkv = jnp.dot(xn_bf, wqkv_ref[...],
                  preferred_element_type=jnp.float32) + bqkv_ref[0]   # (rtile, 3D) f32
    q_ref[0] = (qkv[:, :D] * inv_sqrt_d).astype(jnp.bfloat16)  # 1/sqrt(d_k) folded into q
    kT_ref[0] = qkv[:, D:2 * D].T.astype(jnp.bfloat16)         # store K transposed
    v_ref[0] = qkv[:, 2 * D:].astype(jnp.bfloat16)


def _attn_ffn_kernel(x_ref, bias_ref, xn_ref, q_ref, kT_ref, v_ref,
                     wo_ref, bo_ref, w1_ref, b1_ref, w2_ref, b2_ref,
                     out_ref, attn_ref):
    """Attention + output projection + FFN + both residuals for one (batch, q-tile)."""
    # scores: (tq, T) = (tq, D) @ (D, T) — K already transposed, no per-tile relayout.
    scores = jnp.dot(q_ref[0], kT_ref[0], preferred_element_type=jnp.float32)
    scores = scores + bias_ref[0]           # additive mask: 0 visible, -1e9 masked
    # (A fully-masked row degenerates to a uniform distribution — identical to the
    #  -1e9 masked_fill + softmax reference behavior.)

    m = jnp.max(scores, axis=-1, keepdims=True)
    e = jnp.exp(scores - m)
    p = e * pl.reciprocal(jnp.sum(e, axis=-1, keepdims=True), approx=True)

    p_bf = p.astype(jnp.bfloat16)           # cast once; reused for store + ctx matmul
    if attn_ref.dtype == jnp.bfloat16:
        attn_ref[0] = p_bf
    else:
        attn_ref[0] = p.astype(attn_ref.dtype)

    ctx = jnp.dot(p_bf, v_ref[0], preferred_element_type=jnp.float32)       # (tq, D)
    attn_out = jnp.dot(ctx.astype(jnp.bfloat16), wo_ref[...],
                       preferred_element_type=jnp.float32) + bo_ref[0]

    x2 = x_ref[0] + attn_out                # residual 1 (dropout_1 == identity in eval)

    # norm_2(x2) exists in the reference module but its result is never used
    # (the FFN is fed norm_1's output) — dead code, intentionally omitted.
    h = jnp.dot(xn_ref[0], w1_ref[...], preferred_element_type=jnp.float32) + b1_ref[0]
    h = jnp.maximum(h, 0.0)
    ff = jnp.dot(h.astype(jnp.bfloat16), w2_ref[...],
                 preferred_element_type=jnp.float32) + b2_ref[0]

    out_ref[0] = (x2 + ff).astype(out_ref.dtype)   # residual 2 (dropout_2 == identity)


def _weight_spec(shape, resident):
    """Single-copy VMEM-resident whole-array spec, or blocked constant-index fallback."""
    if resident:
        return pl.BlockSpec(memory_space=pltpu.MemorySpace.VMEM)
    return pl.BlockSpec(shape, lambda *_: (0,) * len(shape))


def _forward(x, bias, g1, b1, wqkv, bqkv, wo, bo, w1, bf1, w2, bf2,
             *, tq, rtile, attn_dtype, resident_weights):
    B, T, D = x.shape
    d_ff = w1.shape[1]
    ws = functools.partial(_weight_spec, resident=resident_weights)

    # ---- kernel 1: LayerNorm + fused QKV, row-tiled, fully parallel grid ----
    xn, q, kT, v = pl.pallas_call(
        _ln_qkv_kernel,
        grid=(B, T // rtile),
        in_specs=[
            pl.BlockSpec((1, rtile, D), lambda b, r: (b, r, 0)),   # x row tile (f32)
            ws((1, D)), ws((1, D)),                                # norm_1 gamma / beta
            ws((D, 3 * D)), ws((1, 3 * D)),                        # fused Wqkv / bqkv
        ],
        out_specs=(
            pl.BlockSpec((1, rtile, D), lambda b, r: (b, r, 0)),   # xn  (norm_1 out)
            pl.BlockSpec((1, rtile, D), lambda b, r: (b, r, 0)),   # q   (pre-scaled)
            pl.BlockSpec((1, D, rtile), lambda b, r: (b, 0, r)),   # k^T
            pl.BlockSpec((1, rtile, D), lambda b, r: (b, r, 0)),   # v
        ),
        out_shape=(
            jax.ShapeDtypeStruct((B, T, D), jnp.bfloat16),
            jax.ShapeDtypeStruct((B, T, D), jnp.bfloat16),
            jax.ShapeDtypeStruct((B, D, T), jnp.bfloat16),
            jax.ShapeDtypeStruct((B, T, D), jnp.bfloat16),
        ),
        compiler_params=pltpu.CompilerParams(
            dimension_semantics=("parallel", "parallel"),
            vmem_limit_bytes=_VMEM_LIMIT_BYTES,
        ),
    )(x, g1, b1, wqkv, bqkv)

    # ---- kernel 2: attention + FFN + residuals, q-tiled, fully parallel grid ----
    out, attn = pl.pallas_call(
        _attn_ffn_kernel,
        grid=(B, T // tq),
        in_specs=[
            pl.BlockSpec((1, tq, D), lambda b, i: (b, i, 0)),      # x residual tile (f32)
            pl.BlockSpec((1, 1, T), lambda b, i: (b, 0, 0)),       # additive mask bias
            pl.BlockSpec((1, tq, D), lambda b, i: (b, i, 0)),      # xn tile (FFN input)
            pl.BlockSpec((1, tq, D), lambda b, i: (b, i, 0)),      # q tile
            pl.BlockSpec((1, D, T), lambda b, i: (b, 0, 0)),       # k^T (per batch)
            pl.BlockSpec((1, T, D), lambda b, i: (b, 0, 0)),       # v   (per batch)
            ws((D, D)), ws((1, D)),                                # Wo / bo
            ws((D, d_ff)), ws((1, d_ff)),                          # W1 / b1
            ws((d_ff, D)), ws((1, D)),                             # W2 / b2
        ],
        out_specs=(
            pl.BlockSpec((1, tq, D), lambda b, i: (b, i, 0)),
            pl.BlockSpec((1, tq, T), lambda b, i: (b, i, 0)),
        ),
        out_shape=(
            jax.ShapeDtypeStruct((B, T, D), jnp.float32),
            jax.ShapeDtypeStruct((B, T, T), attn_dtype),
        ),
        compiler_params=pltpu.CompilerParams(
            dimension_semantics=("parallel", "parallel"),
            vmem_limit_bytes=_VMEM_LIMIT_BYTES,
        ),
    )(x, bias, xn, q, kT, v, wo, bo, w1, bf1, w2, bf2)
    return out, attn


def transformer_block(x, mask, params, *, tq=256, rtile=256, attn_dtype=jnp.bfloat16):
    """x: [B, T, D] f32, mask: [B, T] (1 = visible, 0 = masked).

    Returns (out [B, T, D] f32, attention weights [B, T, T] attn_dtype), matching the
    PyTorch TransformerBlock.forward in eval mode.

    Per-generation tiling guidance (from the perf review):
      * v6e / v7x: tq = 256 fills the 256-wide MXU M dimension.
      * v5e:       tq = 128 (128x128 MXU); the bf16 attention output matters most there.
    """
    B, T, D = x.shape
    tq = min(tq, T)
    rtile = min(rtile, T)
    assert T % tq == 0 and T % rtile == 0, "T must be divisible by the tile sizes"

    # additive mask: 0 where visible, -1e9 where masked (broadcast over query rows)
    bias = ((mask.astype(jnp.float32) - 1.0) * 1e9).reshape(B, 1, T)

    # fused QKV weight; all weights bf16 on the MXU path, biases stay f32 (added to
    # f32 accumulators).
    wqkv = jnp.concatenate(
        [params["wq"], params["wk"], params["wv"]], axis=1).astype(jnp.bfloat16)
    bqkv = jnp.concatenate([params["bq"], params["bk"], params["bv"]], axis=1)
    wo = params["wo"].astype(jnp.bfloat16)
    w1 = params["w1"].astype(jnp.bfloat16)
    w2 = params["w2"].astype(jnp.bfloat16)
    # TODO(synk): optional fp8 quantization of w1/w2 with per-channel scales (v7x only).

    args = (x, bias, params["g1"], params["b1"], wqkv, bqkv, wo, params["bo"],
            w1, params["bf1"], w2, params["bf2"])
    kwargs = dict(tq=tq, rtile=rtile, attn_dtype=attn_dtype)
    try:
        # single-copy VMEM-resident weights (no double buffering of constant blocks)
        return _forward(*args, resident_weights=True, **kwargs)
    except Exception:
        # fallback: blocked constant-index weight specs (always supported)
        return _forward(*args, resident_weights=False, **kwargs)


def reference_block(x, mask, params):
    """Pure-JAX f32 reference mirroring the PyTorch forward exactly (eval mode)."""
    eps = 1e-5
    mu = jnp.mean(x, -1, keepdims=True)
    var = jnp.mean((x - mu) ** 2, -1, keepdims=True)
    xn = (x - mu) / jnp.sqrt(var + eps) * params["g1"][0] + params["b1"][0]

    q = xn @ params["wq"] + params["bq"][0]
    k = xn @ params["wk"] + params["bk"][0]
    v = xn @ params["wv"] + params["bv"][0]
    D = x.shape[-1]
    w = jnp.einsum("btd,bsd->bts", q, k) / math.sqrt(D)
    w = jnp.where(mask[:, None, :] == 0, -1e9, w)
    p = jax.nn.softmax(w, axis=-1)
    attn = jnp.einsum("bts,bsd->btd", p, v) @ params["wo"] + params["bo"][0]
    x2 = x + attn
    h = jnp.maximum(xn @ params["w1"] + params["bf1"][0], 0.0)
    out = x2 + (h @ params["w2"] + params["bf2"][0])
    return out, p


def make_params(key, d_model, d_ff):
    keys = jax.random.split(key, 16)

    def lin(kw, kb, fan_in, fan_out):
        bound = 1.0 / math.sqrt(fan_in)
        w = jax.random.uniform(kw, (fan_in, fan_out), jnp.float32, -bound, bound)
        b = jax.random.uniform(kb, (1, fan_out), jnp.float32, -bound, bound)
        return w, b

    wq, bq = lin(keys[0], keys[1], d_model, d_model)
    wk, bk = lin(keys[2], keys[3], d_model, d_model)
    wv, bv = lin(keys[4], keys[5], d_model, d_model)
    wo, bo = lin(keys[6], keys[7], d_model, d_model)
    w1, bf1 = lin(keys[8], keys[9], d_model, d_ff)
    w2, bf2 = lin(keys[10], keys[11], d_ff, d_model)
    return dict(
        g1=jnp.ones((1, d_model), jnp.float32), b1=jnp.zeros((1, d_model), jnp.float32),
        # norm_2 params exist in the module but its output is dead code in forward()
        g2=jnp.ones((1, d_model), jnp.float32), b2=jnp.zeros((1, d_model), jnp.float32),
        wq=wq, bq=bq, wk=wk, bk=bk, wv=wv, bv=bv, wo=wo, bo=bo,
        w1=w1, bf1=bf1, w2=w2, bf2=bf2,
    )


if __name__ == "__main__":
    # lane-dense small shapes: T, D, D_FF multiples of 128; tq=rtile=128 exercises
    # the tiled path with grid (B, T//tile) = (2, 2) on both kernels.
    B, T, D, D_FF = 2, 256, 128, 512

    key = jax.random.PRNGKey(0)
    kx, kp = jax.random.split(key)
    x = jax.random.normal(kx, (B, T, D), jnp.float32)
    # mask: first batch fully visible, second batch masks the last 64 positions
    mask = jnp.ones((B, T), jnp.float32).at[1, -64:].set(0.0)
    params = make_params(kp, D, D_FF)

    out, attn_w = transformer_block(x, mask, params, tq=128, rtile=128)
    out = jax.block_until_ready(out)
    attn_w = jax.block_until_ready(attn_w)

    ref_out, ref_w = reference_block(x, mask, params)
    assert out.shape == (B, T, D) and attn_w.shape == (B, T, T)
    # tolerances absorb bf16 matmuls, bf16 attention-weight storage, approx reciprocal
    assert jnp.allclose(out, ref_out, rtol=3e-2, atol=3e-2), "output mismatch vs reference"
    assert jnp.allclose(attn_w.astype(jnp.float32), ref_w, rtol=5e-2, atol=3e-3), \
        "attention weights mismatch"

    print("KERNEL_OK")
</pallas_src>

<mosaic_0001>
module attributes {stable_mosaic.version = 11 : i64} {
  func.func @_ln_qkv_kernel(%arg0: i32, %arg1: i32, %arg2: memref<1x128x128xf32, #tpu.memory_space<vmem>>, %arg3: memref<1x128xf32, #tpu.memory_space<vmem>>, %arg4: memref<1x128xf32, #tpu.memory_space<vmem>>, %arg5: memref<128x384xbf16, #tpu.memory_space<vmem>>, %arg6: memref<1x384xf32, #tpu.memory_space<vmem>>, %arg7: memref<1x128x128xbf16, #tpu.memory_space<vmem>>, %arg8: memref<1x128x128xbf16, #tpu.memory_space<vmem>>, %arg9: memref<1x128x128xbf16, #tpu.memory_space<vmem>>, %arg10: memref<1x128x128xbf16, #tpu.memory_space<vmem>>) attributes {dimension_semantics = [#tpu.dimension_semantics<parallel>, #tpu.dimension_semantics<parallel>], iteration_bounds = array<i64: 2, 2>, scalar_prefetch = 0 : i64, scratch_operands = 0 : i64, tpu.core_type = #tpu.core_type<tc>, window_params = [{transform_indices = @transform_0, window_bounds = array<i64: 1, 128, 128>}, {pipeline_mode = #tpu.pipeline_mode<synchronous>, transform_indices = @transform_1, window_bounds = array<i64: 1, 128>}, {pipeline_mode = #tpu.pipeline_mode<synchronous>, transform_indices = @transform_2, window_bounds = array<i64: 1, 128>}, {pipeline_mode = #tpu.pipeline_mode<synchronous>, transform_indices = @transform_3, window_bounds = array<i64: 128, 384>}, {pipeline_mode = #tpu.pipeline_mode<synchronous>, transform_indices = @transform_4, window_bounds = array<i64: 1, 384>}, {transform_indices = @transform_5, window_bounds = array<i64: 1, 128, 128>}, {transform_indices = @transform_6, window_bounds = array<i64: 1, 128, 128>}, {transform_indices = @transform_7, window_bounds = array<i64: 1, 128, 128>}, {transform_indices = @transform_8, window_bounds = array<i64: 1, 128, 128>}]} {
    %c0 = arith.constant 0 : index
    %c0_0 = arith.constant 0 : index
    %c0_1 = arith.constant 0 : index
    %0 = vector.load %arg2[%c0, %c0_0, %c0_1] : memref<1x128x128xf32, #tpu.memory_space<vmem>>, vector<1x128x128xf32>
    %1 = vector.shape_cast %0 : vector<1x128x128xf32> to vector<128x128xf32>
    %cst = arith.constant dense<0.000000e+00> : vector<128xf32>
    %2 = vector.multi_reduction <add>, %1, %cst [1] : vector<128x128xf32> to vector<128xf32>
    %3 = vector.shape_cast %2 : vector<128xf32> to vector<128x1xf32>
    %cst_2 = arith.constant 1.280000e+02 : f32
    %4 = vector.broadcast %cst_2 : f32 to vector<128x1xf32>
    %5 = arith.divf %3, %4 : vector<128x1xf32>
    %6 = vector.broadcast %5 : vector<128x1xf32> to vector<128x128xf32>
    %7 = arith.subf %1, %6 : vector<128x128xf32>
    %8 = arith.mulf %7, %7 : vector<128x128xf32>
    %cst_3 = arith.constant dense<0.000000e+00> : vector<128xf32>
    %9 = vector.multi_reduction <add>, %8, %cst_3 [1] : vector<128x128xf32> to vector<128xf32>
    %10 = vector.shape_cast %9 : vector<128xf32> to vector<128x1xf32>
    %cst_4 = arith.constant 1.280000e+02 : f32
    %11 = vector.broadcast %cst_4 : f32 to vector<128x1xf32>
    %12 = arith.divf %10, %11 : vector<128x1xf32>
    %cst_5 = arith.constant 9.99999974E-6 : f32
    %13 = vector.broadcast %cst_5 : f32 to vector<128x1xf32>
    %14 = arith.addf %12, %13 : vector<128x1xf32>
    %15 = math.rsqrt %14 : vector<128x1xf32>
    %16 = vector.broadcast %15 : vector<128x1xf32> to vector<128x128xf32>
    %17 = arith.mulf %7, %16 : vector<128x128xf32>
    %c0_6 = arith.constant 0 : index
    %c0_7 = arith.constant 0 : index
    %18 = vector.load %arg3[%c0_6, %c0_7] : memref<1x128xf32, #tpu.memory_space<vmem>>, vector<1x128xf32>
    %19 = vector.shape_cast %18 : vector<1x128xf32> to vector<128xf32>
    %20 = vector.shape_cast %19 : vector<128xf32> to vector<1x128xf32>
    %21 = vector.broadcast %20 : vector<1x128xf32> to vector<128x128xf32>
    %22 = arith.mulf %17, %21 : vector<128x128xf32>
    %c0_8 = arith.constant 0 : index
    %c0_9 = arith.constant 0 : index
    %23 = vector.load %arg4[%c0_8, %c0_9] : memref<1x128xf32, #tpu.memory_space<vmem>>, vector<1x128xf32>
    %24 = vector.shape_cast %23 : vector<1x128xf32> to vector<128xf32>
    %25 = vector.shape_cast %24 : vector<128xf32> to vector<1x128xf32>
    %26 = vector.broadcast %25 : vector<1x128xf32> to vector<128x128xf32>
    %27 = arith.addf %22, %26 : vector<128x128xf32>
    %28 = arith.truncf %27 : vector<128x128xf32> to vector<128x128xbf16>
    %c0_10 = arith.constant 0 : index
    %c0_11 = arith.constant 0 : index
    %c0_12 = arith.constant 0 : index
    %29 = vector.load %arg7[%c0_10, %c0_11, %c0_12] : memref<1x128x128xbf16, #tpu.memory_space<vmem>>, vector<1x128x128xbf16>
    %30 = vector.shape_cast %29 : vector<1x128x128xbf16> to vector<128x128xbf16>
    %31 = vector.shape_cast %28 : vector<128x128xbf16> to vector<1x128x128xbf16>
    tpu.vector_store %arg7[%c0_10, %c0_11, %c0_12], %31 {strides = array<i32>} : memref<1x128x128xbf16, #tpu.memory_space<vmem>>, vector<1x128x128xbf16>,
    %c0_13 = arith.constant 0 : index
    %c0_14 = arith.constant 0 : index
    %32 = vector.load %arg5[%c0_13, %c0_14] : memref<128x384xbf16, #tpu.memory_space<vmem>>, vector<128x384xbf16>
    %cst_15 = arith.constant dense<0.000000e+00> : vector<128x384xf32>
    %33 = tpu.matmul %28, %32, %cst_15 {dimension_numbers = #tpu.dot_dimension_numbers<[1], [0], [0], [1], [0, 0, 1, 1], [], []>} : vector<128x128xbf16>, vector<128x384xbf16>, vector<128x384xf32> -> vector<128x384xf32>
    %c0_16 = arith.constant 0 : index
    %c0_17 = arith.constant 0 : index
    %34 = vector.load %arg6[%c0_16, %c0_17] : memref<1x384xf32, #tpu.memory_space<vmem>>, vector<1x384xf32>
    %35 = vector.shape_cast %34 : vector<1x384xf32> to vector<384xf32>
    %36 = vector.shape_cast %35 : vector<384xf32> to vector<1x384xf32>
    %37 = vector.broadcast %36 : vector<1x384xf32> to vector<128x384xf32>
    %38 = arith.addf %33, %37 : vector<128x384xf32>
    %39 = vector.extract_strided_slice %38 {offsets = [0, 0], sizes = [128, 128], strides = [1, 1]} : vector<128x384xf32> to vector<128x128xf32>
    %cst_18 = arith.constant 0.0883883461 : f32
    %40 = vector.broadcast %cst_18 : f32 to vector<128x128xf32>
    %41 = arith.mulf %39, %40 : vector<128x128xf32>
    %42 = arith.truncf %41 : vector<128x128xf32> to vector<128x128xbf16>
    %c0_19 = arith.constant 0 : index
    %c0_20 = arith.constant 0 : index
    %c0_21 = arith.constant 0 : index
    %43 = vector.load %arg8[%c0_19, %c0_20, %c0_21] : memref<1x128x128xbf16, #tpu.memory_space<vmem>>, vector<1x128x128xbf16>
    %44 = vector.shape_cast %43 : vector<1x128x128xbf16> to vector<128x128xbf16>
    %45 = vector.shape_cast %42 : vector<128x128xbf16> to vector<1x128x128xbf16>
    tpu.vector_store %arg8[%c0_19, %c0_20, %c0_21], %45 {strides = array<i32>} : memref<1x128x128xbf16, #tpu.memory_space<vmem>>, vector<1x128x128xbf16>,
    %46 = vector.extract_strided_slice %38 {offsets = [0, 128], sizes = [128, 128], strides = [1, 1]} : vector<128x384xf32> to vector<128x128xf32>
    %47 = tpu.transpose %46, [1, 0] : vector<128x128xf32> -> vector<128x128xf32>
    %48 = arith.truncf %47 : vector<128x128xf32> to vector<128x128xbf16>
    %c0_22 = arith.constant 0 : index
    %c0_23 = arith.constant 0 : index
    %c0_24 = arith.constant 0 : index
    %49 = vector.load %arg9[%c0_22, %c0_23, %c0_24] : memref<1x128x128xbf16, #tpu.memory_space<vmem>>, vector<1x128x128xbf16>
    %50 = vector.shape_cast %49 : vector<1x128x128xbf16> to vector<128x128xbf16>
    %51 = vector.shape_cast %48 : vector<128x128xbf16> to vector<1x128x128xbf16>
    tpu.vector_store %arg9[%c0_22, %c0_23, %c0_24], %51 {strides = array<i32>} : memref<1x128x128xbf16, #tpu.memory_space<vmem>>, vector<1x128x128xbf16>,
    %52 = vector.extract_strided_slice %38 {offsets = [0, 256], sizes = [128, 128], strides = [1, 1]} : vector<128x384xf32> to vector<128x128xf32>
    %53 = arith.truncf %52 : vector<128x128xf32> to vector<128x128xbf16>
    %c0_25 = arith.constant 0 : index
    %c0_26 = arith.constant 0 : index
    %c0_27 = arith.constant 0 : index
    %54 = vector.load %arg10[%c0_25, %c0_26, %c0_27] : memref<1x128x128xbf16, #tpu.memory_space<vmem>>, vector<1x128x128xbf16>
    %55 = vector.shape_cast %54 : vector<1x128x128xbf16> to vector<128x128xbf16>
    %56 = vector.shape_cast %53 : vector<128x128xbf16> to vector<1x128x128xbf16>
    tpu.vector_store %arg10[%c0_25, %c0_26, %c0_27], %56 {strides = array<i32>} : memref<1x128x128xbf16, #tpu.memory_space<vmem>>, vector<1x128x128xbf16>,
    return
  }
  func.func @transform_0(%arg0: i32, %arg1: i32) -> (i32, i32, i32) {
    %c0_i32 = arith.constant 0 : i32
    %c0_i32_0 = arith.constant 0 : i32
    return %arg0, %arg1, %c0_i32 : i32, i32, i32
  }
  func.func @transform_1(%arg0: i32, %arg1: i32) -> (i32, i32) {
    %c0_i32 = arith.constant 0 : i32
    %c0_i32_0 = arith.constant 0 : i32
    %c0_i32_1 = arith.constant 0 : i32
    return %c0_i32, %c0_i32_0 : i32, i32
  }
  func.func @transform_2(%arg0: i32, %arg1: i32) -> (i32, i32) {
    %c0_i32 = arith.constant 0 : i32
    %c0_i32_0 = arith.constant 0 : i32
    %c0_i32_1 = arith.constant 0 : i32
    return %c0_i32, %c0_i32_0 : i32, i32
  }
  func.func @transform_3(%arg0: i32, %arg1: i32) -> (i32, i32) {
    %c0_i32 = arith.constant 0 : i32
    %c0_i32_0 = arith.constant 0 : i32
    %c0_i32_1 = arith.constant 0 : i32
    return %c0_i32, %c0_i32_0 : i32, i32
  }
  func.func @transform_4(%arg0: i32, %arg1: i32) -> (i32, i32) {
    %c0_i32 = arith.constant 0 : i32
    %c0_i32_0 = arith.constant 0 : i32
    %c0_i32_1 = arith.constant 0 : i32
    return %c0_i32, %c0_i32_0 : i32, i32
  }
  func.func @transform_5(%arg0: i32, %arg1: i32) -> (i32, i32, i32) {
    %c0_i32 = arith.constant 0 : i32
    %c0_i32_0 = arith.constant 0 : i32
    return %arg0, %arg1, %c0_i32 : i32, i32, i32
  }
  func.func @transform_6(%arg0: i32, %arg1: i32) -> (i32, i32, i32) {
    %c0_i32 = arith.constant 0 : i32
    %c0_i32_0 = arith.constant 0 : i32
    return %arg0, %arg1, %c0_i32 : i32, i32, i32
  }
  func.func @transform_7(%arg0: i32, %arg1: i32) -> (i32, i32, i32) {
    %c0_i32 = arith.constant 0 : i32
    %c0_i32_0 = arith.constant 0 : i32
    return %arg0, %c0_i32, %arg1 : i32, i32, i32
  }
  func.func @transform_8(%arg0: i32, %arg1: i32) -> (i32, i32, i32) {
    %c0_i32 = arith.constant 0 : i32
    %c0_i32_0 = arith.constant 0 : i32
    return %arg0, %arg1, %c0_i32 : i32, i32, i32
  }
}

module attributes {stable_mosaic.version = 11 : i64} {
  func.func @_ln_qkv_kernel(%arg0: i32, %arg1: i32, %arg2: memref<1x128x128xf32, #tpu.memory_space<vmem>>, %arg3: memref<1x128xf32, #tpu.memory_space<vmem>>, %arg4: memref<1x128xf32, #tpu.memory_space<vmem>>, %arg5: memref<128x384xbf16, #tpu.memory_space<vmem>>, %arg6: memref<1x384xf32, #tpu.memory_space<vmem>>, %arg7: memref<1x128x128xbf16, #tpu.memory_space<vmem>>, %arg8: memref<1x128x128xbf16, #tpu.memory_space<vmem>>, %arg9: memref<1x128x128xbf16, #tpu.memory_space<vmem>>, %arg10: memref<1x128x128xbf16, #tpu.memory_space<vmem>>) attributes {dimension_semantics = [#tpu.dimension_semantics<parallel>, #tpu.dimension_semantics<parallel>], iteration_bounds = array<i64: 2, 2>, scalar_prefetch = 0 : i64, scratch_operands = 0 : i64, tpu.core_type = #tpu.core_type<tc>, window_params = [{transform_indices = @transform_0, window_bounds = array<i64: 1, 128, 128>}, {pipeline_mode = #tpu.pipeline_mode<synchronous>, transform_indices = @transform_1, window_bounds = array<i64: 1, 128>}, {pipeline_mode = #tpu.pipeline_mode<synchronous>, transform_indices = @transform_2, window_bounds = array<i64: 1, 128>}, {pipeline_mode = #tpu.pipeline_mode<synchronous>, transform_indices = @transform_3, window_bounds = array<i64: 128, 384>}, {pipeline_mode = #tpu.pipeline_mode<synchronous>, transform_indices = @transform_4, window_bounds = array<i64: 1, 384>}, {transform_indices = @transform_5, window_bounds = array<i64: 1, 128, 128>}, {transform_indices = @transform_6, window_bounds = array<i64: 1, 128, 128>}, {transform_indices = @transform_7, window_bounds = array<i64: 1, 128, 128>}, {transform_indices = @transform_8, window_bounds = array<i64: 1, 128, 128>}]} {
    %c0 = arith.constant 0 : index
    %c0_0 = arith.constant 0 : index
    %c0_1 = arith.constant 0 : index
    %0 = vector.load %arg2[%c0, %c0_0, %c0_1] : memref<1x128x128xf32, #tpu.memory_space<vmem>>, vector<1x128x128xf32>
    %1 = vector.shape_cast %0 : vector<1x128x128xf32> to vector<128x128xf32>
    %cst = arith.constant dense<0.000000e+00> : vector<128xf32>
    %2 = vector.multi_reduction <add>, %1, %cst [1] : vector<128x128xf32> to vector<128xf32>
    %3 = vector.shape_cast %2 : vector<128xf32> to vector<128x1xf32>
    %cst_2 = arith.constant 1.280000e+02 : f32
    %4 = vector.broadcast %cst_2 : f32 to vector<128x1xf32>
    %5 = arith.divf %3, %4 : vector<128x1xf32>
    %6 = vector.broadcast %5 : vector<128x1xf32> to vector<128x128xf32>
    %7 = arith.subf %1, %6 : vector<128x128xf32>
    %8 = arith.mulf %7, %7 : vector<128x128xf32>
    %cst_3 = arith.constant dense<0.000000e+00> : vector<128xf32>
    %9 = vector.multi_reduction <add>, %8, %cst_3 [1] : vector<128x128xf32> to vector<128xf32>
    %10 = vector.shape_cast %9 : vector<128xf32> to vector<128x1xf32>
    %cst_4 = arith.constant 1.280000e+02 : f32
    %11 = vector.broadcast %cst_4 : f32 to vector<128x1xf32>
    %12 = arith.divf %10, %11 : vector<128x1xf32>
    %cst_5 = arith.constant 9.99999974E-6 : f32
    %13 = vector.broadcast %cst_5 : f32 to vector<128x1xf32>
    %14 = arith.addf %12, %13 : vector<128x1xf32>
    %15 = math.rsqrt %14 : vector<128x1xf32>
    %16 = vector.broadcast %15 : vector<128x1xf32> to vector<128x128xf32>
    %17 = arith.mulf %7, %16 : vector<128x128xf32>
    %c0_6 = arith.constant 0 : index
    %c0_7 = arith.constant 0 : index
    %18 = vector.load %arg3[%c0_6, %c0_7] : memref<1x128xf32, #tpu.memory_space<vmem>>, vector<1x128xf32>
    %19 = vector.shape_cast %18 : vector<1x128xf32> to vector<128xf32>
    %20 = vector.shape_cast %19 : vector<128xf32> to vector<1x128xf32>
    %21 = vector.broadcast %20 : vector<1x128xf32> to vector<128x128xf32>
    %22 = arith.mulf %17, %21 : vector<128x128xf32>
    %c0_8 = arith.constant 0 : index
    %c0_9 = arith.constant 0 : index
    %23 = vector.load %arg4[%c0_8, %c0_9] : memref<1x128xf32, #tpu.memory_space<vmem>>, vector<1x128xf32>
    %24 = vector.shape_cast %23 : vector<1x128xf32> to vector<128xf32>
    %25 = vector.shape_cast %24 : vector<128xf32> to vector<1x128xf32>
    %26 = vector.broadcast %25 : vector<1x128xf32> to vector<128x128xf32>
    %27 = arith.addf %22, %26 : vector<128x128xf32>
    %28 = arith.truncf %27 : vector<128x128xf32> to vector<128x128xbf16>
    %c0_10 = arith.constant 0 : index
    %c0_11 = arith.constant 0 : index
    %c0_12 = arith.constant 0 : index
    %29 = vector.load %arg7[%c0_10, %c0_11, %c0_12] : memref<1x128x128xbf16, #tpu.memory_space<vmem>>, vector<1x128x128xbf16>
    %30 = vector.shape_cast %29 : vector<1x128x128xbf16> to vector<128x128xbf16>
    %31 = vector.shape_cast %28 : vector<128x128xbf16> to vector<1x128x128xbf16>
    tpu.vector_store %arg7[%c0_10, %c0_11, %c0_12], %31 {strides = array<i32>} : memref<1x128x128xbf16, #tpu.memory_space<vmem>>, vector<1x128x128xbf16>,
    %c0_13 = arith.constant 0 : index
    %c0_14 = arith.constant 0 : index
    %32 = vector.load %arg5[%c0_13, %c0_14] : memref<128x384xbf16, #tpu.memory_space<vmem>>, vector<128x384xbf16>
    %cst_15 = arith.constant dense<0.000000e+00> : vector<128x384xf32>
    %33 = tpu.matmul %28, %32, %cst_15 {dimension_numbers = #tpu.dot_dimension_numbers<[1], [0], [0], [1], [0, 0, 1, 1], [], []>} : vector<128x128xbf16>, vector<128x384xbf16>, vector<128x384xf32> -> vector<128x384xf32>
    %c0_16 = arith.constant 0 : index
    %c0_17 = arith.constant 0 : index
    %34 = vector.load %arg6[%c0_16, %c0_17] : memref<1x384xf32, #tpu.memory_space<vmem>>, vector<1x384xf32>
    %35 = vector.shape_cast %34 : vector<1x384xf32> to vector<384xf32>
    %36 = vector.shape_cast %35 : vector<384xf32> to vector<1x384xf32>
    %37 = vector.broadcast %36 : vector<1x384xf32> to vector<128x384xf32>
    %38 = arith.addf %33, %37 : vector<128x384xf32>
    %39 = vector.extract_strided_slice %38 {offsets = [0, 0], sizes = [128, 128], strides = [1, 1]} : vector<128x384xf32> to vector<128x128xf32>
    %cst_18 = arith.constant 0.0883883461 : f32
    %40 = vector.broadcast %cst_18 : f32 to vector<128x128xf32>
    %41 = arith.mulf %39, %40 : vector<128x128xf32>
    %42 = arith.truncf %41 : vector<128x128xf32> to vector<128x128xbf16>
    %c0_19 = arith.constant 0 : index
    %c0_20 = arith.constant 0 : index
    %c0_21 = arith.constant 0 : index
    %43 = vector.load %arg8[%c0_19, %c0_20, %c0_21] : memref<1x128x128xbf16, #tpu.memory_space<vmem>>, vector<1x128x128xbf16>
    %44 = vector.shape_cast %43 : vector<1x128x128xbf16> to vector<128x128xbf16>
    %45 = vector.shape_cast %42 : vector<128x128xbf16> to vector<1x128x128xbf16>
    tpu.vector_store %arg8[%c0_19, %c0_20, %c0_21], %45 {strides = array<i32>} : memref<1x128x128xbf16, #tpu.memory_space<vmem>>, vector<1x128x128xbf16>,
    %46 = vector.extract_strided_slice %38 {offsets = [0, 128], sizes = [128, 128], strides = [1, 1]} : vector<128x384xf32> to vector<128x128xf32>
    %47 = tpu.transpose %46, [1, 0] : vector<128x128xf32> -> vector<128x128xf32>
    %48 = arith.truncf %47 : vector<128x128xf32> to vector<128x128xbf16>
    %c0_22 = arith.constant 0 : index
    %c0_23 = arith.constant 0 : index
    %c0_24 = arith.constant 0 : index
    %49 = vector.load %arg9[%c0_22, %c0_23, %c0_24] : memref<1x128x128xbf16, #tpu.memory_space<vmem>>, vector<1x128x128xbf16>
    %50 = vector.shape_cast %49 : vector<1x128x128xbf16> to vector<128x128xbf16>
    %51 = vector.shape_cast %48 : vector<128x128xbf16> to vector<1x128x128xbf16>
    tpu.vector_store %arg9[%c0_22, %c0_23, %c0_24], %51 {strides = array<i32>} : memref<1x128x128xbf16, #tpu.memory_space<vmem>>, vector<1x128x128xbf16>,
    %52 = vector.extract_strided_slice %38 {offsets = [0, 256], sizes = [128, 128], strides = [1, 1]} : vector<128x384xf32> to vector<128x128xf32>
    %53 = arith.truncf %52 : vector<128x128xf32> to vector<128x128xbf16>
    %c0_25 = arith.constant 0 : index
    %c0_26 = arith.constant 0 : index
    %c0_27 = arith.constant 0 : index
    %54 = vector.load %arg10[%c0_25, %c0_26, %c0_27] : memref<1x128x128xbf16, #tpu.memory_space<vmem>>, vector<1x128x128xbf16>
    %55 = vector.shape_cast %54 : vector<1x128x128xbf16> to vector<128x128xbf16>
    %56 = vector.shape_cast %53 : vector<128x128xbf16> to vector<1x128x128xbf16>
    tpu.vector_store %arg10[%c0_25, %c0_26, %c0_27], %56 {strides = array<i32>} : memref<1x128x128xbf16, #tpu.memory_space<vmem>>, vector<1x128x128xbf16>,
    return
  }
  func.func @transform_0(%arg0: i32, %arg1: i32) -> (i32, i32, i32) {
    %c0_i32 = arith.constant 0 : i32
    %c0_i32_0 = arith.constant 0 : i32
    return %arg0, %arg1, %c0_i32 : i32, i32, i32
  }
  func.func @transform_1(%arg0: i32, %arg1: i32) -> (i32, i32) {
    %c0_i32 = arith.constant 0 : i32
    %c0_i32_0 = arith.constant 0 : i32
    %c0_i32_1 = arith.constant 0 : i32
    return %c0_i32, %c0_i32_0 : i32, i32
  }
  func.func @transform_2(%arg0: i32, %arg1: i32) -> (i32, i32) {
    %c0_i32 = arith.constant 0 : i32
    %c0_i32_0 = arith.constant 0 : i32
    %c0_i32_1 = arith.constant 0 : i32
    return %c0_i32, %c0_i32_0 : i32, i32
  }
  func.func @transform_3(%arg0: i32, %arg1: i32) -> (i32, i32) {
    %c0_i32 = arith.constant 0 : i32
    %c0_i32_0 = arith.constant 0 : i32
    %c0_i32_1 = arith.constant 0 : i32
    return %c0_i32, %c0_i32_0 : i32, i32
  }
  func.func @transform_4(%arg0: i32, %arg1: i32) -> (i32, i32) {
    %c0_i32 = arith.constant 0 : i32
    %c0_i32_0 = arith.constant 0 : i32
    %c0_i32_1 = arith.constant 0 : i32
    return %c0_i32, %c0_i32_0 : i32, i32
  }
  func.func @transform_5(%arg0: i32, %arg1: i32) -> (i32, i32, i32) {
    %c0_i32 = arith.constant 0 : i32
    %c0_i32_0 = arith.constant 0 : i32
    return %arg0, %arg1, %c0_i32 : i32, i32, i32
  }
  func.func @transform_6(%arg0: i32, %arg1: i32) -> (i32, i32, i32) {
    %c0_i32 = arith.constant 0 : i32
    %c0_i32_0 = arith.constant 0 : i32
    return %arg0, %arg1, %c0_i32 : i32, i32, i32
  }
  func.func @transform_7(%arg0: i32, %arg1: i32) -> (i32, i32, i32) {
    %c0_i32 = arith.constant 0 : i32
    %c0_i32_0 = arith.constant 0 : i32
    return %arg0, %c0_i32, %arg1 : i32, i32, i32
  }
  func.func @transform_8(%arg0: i32, %arg1: i32) -> (i32, i32, i32) {
    %c0_i32 = arith.constant 0 : i32
    %c0_i32_0 = arith.constant 0 : i32
    return %arg0, %arg1, %c0_i32 : i32, i32, i32
  }
}

</mosaic_0001>

<bundles_post_ra>
// kernel: tpu_custom_call.1
= control target key start
LH: loop header
LB: loop body
LE: loop exit
PB: predicated region body
PF: predicated region fallthrough
CT: control target
= control target key end

     0   :  { %s3235_s0 = inlined_call_operand.hbm [shape: f32[2,256,128], index: 0, kind: input, shape index: {}]   ;;  %s3236_s1 = inlined_call_operand.vmem [shape: f32[1,128], index: 1, kind: input, shape index: {}]   ;;  %s3237_s2 = inlined_call_operand.vmem [shape: f32[1,128], index: 2, kind: input, shape index: {}]   ;;  %s3238_s3 = inlined_call_operand.hbm [shape: bf16[128,384], index: 3, kind: input, shape index: {}]   ;;  %s3239_s4 = inlined_call_operand.vmem [shape: f32[1,384], index: 4, kind: input, shape index: {}]   ;;  %s3240_s5 = inlined_call_operand.hbm [shape: bf16[2,256,128], index: 5, kind: output, shape index: {0}]   ;;  %s3241_s6 = inlined_call_operand.hbm [shape: bf16[2,256,128], index: 6, kind: output, shape index: {1}]   ;;  %s3242_s7 = inlined_call_operand.hbm [shape: bf16[2,128,256], index: 7, kind: output, shape index: {2}]   ;;  %s3243_s8 = inlined_call_operand.hbm [shape: bf16[2,256,128], index: 8, kind: output, shape index: {3}]  }
   0x1   :  { %3258 = sst [smem:[#allocation23_spill]] %s3235_s0 }
   0x2   :  { %3259 = sst [smem:[#allocation24_spill]] %s3236_s1 }
   0x3   :  { %3260 = sst [smem:[#allocation25_spill]] %s3238_s3 }
   0x4   :  { %3261 = sst [smem:[#allocation26_spill]] %s3240_s5 }
   0x5   :  { %3262 = sst [smem:[#allocation27_spill]] %s3241_s6 }
   0x6   :  { %3263 = sst [smem:[#allocation28_spill]] %s3242_s7 }
   0x7   :  { %3264 = sst [smem:[#allocation29_spill]] %s3243_s8 }
   0x8   :  { %14 = vsyncpa [#allocation3], 0 }
   0x9   :  { %16 = vsyncpa [#allocation3 + $0x1], 0 }
   0xa   :  { %17 = vsyncpa [#allocation6], 0 }
   0xb   :  { %18 = vsyncpa [#allocation4], 0 }
   0xc   :  { %20 = vsyncpa [#allocation4 + $0x1], 0 }
   0xd   :  { %21 = vsyncpa [#allocation9], 0 }
   0xe   :  { %23 = vsyncpa [#allocation9 + $0x1], 0 }
   0xf   :  { %24 = vsyncpa [#allocation12], 0 }
  0x10   :  { %26 = vsyncpa [#allocation12 + $0x1], 0  ;;  %s2587_s27 = smov 0   ;;  %s2589_s28 = smov 0  }
  0x11   :  { %s2591_s29 = smov 0   ;;  %s2593_s30 = smov 0  }
  0x12   :  { %s2595_s9 = smov 0   ;;  %s2597_s10 = smov 0  }
  0x13   :  { %s2599_s11 = smov 0   ;;  %s2601_s12 = smov 0  }
  0x14 LB: > { %3265 = sst [smem:[#allocation18_spill]] %s2498_s27  ;;  %s2628_s13 = sadd.s32 4294967295, %s2526_s12   ;;  %s2526_s12 = sphi %s2601_s12, %s32_s12   ;;  %s2522_s11 = sphi %s2599_s11, %s3302_s11   ;;  %s2518_s10 = sphi %s2597_s10, %s3296_s10   ;;  %s2514_s9 = sphi %s2595_s9, %s3301_s9   ;;  %s2510_s30 = sphi %s2593_s30, %s3295_s30   ;;  %s2506_s29 = sphi %s2591_s29, %s3300_s29   ;;  %s2502_s28 = sphi %s2589_s28, %s3299_s28   ;;  %s2498_s27 = sphi %s2587_s27, %s3298_s27  }
  0x15   : > { %3266 = sst [smem:[#allocation19_spill]] %s2518_s10  ;;  %s3244_s14 = sadd.s32 4294967294, %s2526_s12  }
  0x16   : > { %p66_p0 = scmp.ne.s32.totalorder %s2502_s28, %s2498_s27  ;;  %p3245_p1 = scmp.eq.s32.totalorder %s2628_s13, 0 }
  0x17   : > { %p182_p3 = scmp.eq.s32.totalorder %s3244_s14, 3  ;;  %p1677_p5 = scmp.ge.s32.totalorder %s2526_s12, 1 }
  0x18   : > { %p2639_p4 = por %p3245_p1, %p66_p0  ;;  %p273_p7 = scmp.lt.s32.totalorder %s2526_s12, 5 }
  0x19   : > { %p2644_p6 = por %p182_p3, %p66_p0  ;;  %s2528_s18 = smov [#allocation5]  }
  0x1a   : > { %s3267_s15 = scalar_select %p2639_p4, 1, 0 }
  0x1b   : > { %s3268_s16 = scalar_select %p2644_p6, 1, 0 }
  0x1c   : > { %p2649_p8 = pnand %p1677_p5, %p273_p7  ;;  %s291_s19 = sshll.u32 %s2528_s18, 4  ;;  %s292_s19 = int_to_ptr.vmem [resolvable:$true] %s291_s19 }
  0x1d   : > { %3269 = sst [smem:[#allocation20_spill]] %s3268_s16  ;;  %s3272_s3 = sld [smem:[#allocation25_spill]] }
  0x1e   : > { %s3270_s17 = scalar_select %p2649_p8, 1, 0 }
  0x1f   : > { %p2112_p9 = pneg %p2649_p8 }
  0x21   : > { %p2657_p10 = pnand %p2112_p9, %p3245_p1 }
  0x23   : > { %s2274_s23 = scalar_lea.hbm %s3272_s3, 3072  ;;  %p2276_p12 = pneg %p2657_p10 }
  0x24   : > { %p2275_p11 = scmp.ne.s32.totalorder %s3272_s3, %s2274_s23  ;;  %p2281_p3 = scmp.lt.u32.totalorder %s2274_s23, %s3272_s3 }
  0x26   : > { %p2277_p13 = pnand %p2276_p12, %p2275_p11 }
  0x28   : > { %p2278_p0 = pneg %p2277_p13 }
  0x2a   : > { %p2283_p5 = pnand %p2281_p3, %p2278_p0 }
  0x2c   : > { %2286 = shalt.err (!%p2283_p5)
}
  0x2d   : > { %s2287_s14 = scalar_lea.vmem %s292_s19, 3072  ;;  %p2295_p2 = scmp.lt.s32.totalorder %s292_s19, %s292_s19 }
  0x2e   : > { %p2288_p7 = scmp.ne.s32.totalorder %s292_s19, %s2287_s14  ;;  %p2296_p6 = scmp.lt.s32.totalorder %s2287_s14, %s2287_s14 }
  0x30   : > { %p2290_p9 = pnand %p2288_p7, %p2276_p12  ;;  %p2297_p4 = por %p2296_p6, %p2295_p2 }
  0x32   : > { %p2291_p1 = pneg %p2290_p9 }
  0x34   : > { %p2298_p8 = pnand %p2297_p4, %p2291_p1 }
  0x36   : > { %2301 = shalt.err (!%p2298_p8)
}
  0x37   : > { %s2529_s21 = smov 192   ;;  %s2530_s22 = smov 12  }
  0x38   : > { %2115 = dma.hbm_to_vmem [thread:$0]  (!%p2657_p10), %s3272_s3, 3072, %s292_s19, [#allocation6], %s2529_s21, %s2529_s21, %s2530_s22  }
  0x39   : > { %s41_s14 = sadd.s32 1, %s2518_s10  ;;  %s44_s25 = sadd.s32 1, %s2522_s11 }
  0x3a   : > { %p42_p1 = scmp.ge.s32.totalorder %s41_s14, 2  ;;  %s53_s26 = sadd.s32 1, %s2506_s29 }
  0x3b   : > { %p60_p2 = scmp.ne.s32.totalorder %s2506_s29, %s2502_s28  ;;  %p61_p4 = scmp.eq.s32.totalorder %s2526_s12, 0 }
  0x3c   : > { %s3304_s14 = smov (%p42_p1, %s41_s14), 0  ;;  %s3306_s25 = smov (!%p42_p1, %s44_s25), %s2522_s11 }
  0x3d   : > { %3273 = sst [smem:[#allocation21_spill]] %s3304_s14  ;;  %s49_s18 = ssub.s32 %s2518_s10, %s3304_s14 }
  0x3e   : > { %p46_p6 = scmp.ge.s32.totalorder %s3306_s25, 2  ;;  %p3274_p8 = scmp.eq.s32.totalorder %s2628_s13, 3 }
  0x3f   : > { %p2694_p10 = por %p61_p4, %p60_p2  ;;  %p2134_p12 = scmp.lt.s32.totalorder %s2526_s12, 4 }
  0x40   : > { %p2690_p11 = por %p3274_p8, %p60_p2  ;;  %s3308_s25 = smov (%p46_p6, %s3306_s25), 0 }
  0x41   : > { %3277 = sst [smem:[#allocation22_spill]] %s3308_s25  ;;  %s308_s21 = sand.u32 1, %s2506_s29  }
  0x42   : > { %s1681_s22 = sshll.u32 %s2518_s10, 4  ;;  %s48_s23 = ssub.s32 %s2522_s11, %s3308_s25 }
  0x43   : > { %s50_s24 = sor.u32 %s49_s18, %s48_s23  ;;  %s1680_s3 = sshll.u32 %s308_s21, 7 }
  0x44   : > { %p51_p13 = scmp.eq.s32.totalorder %s50_s24, 0  ;;  %s1682_s14 = sshll.u32 %s2522_s11, 5 }
  0x45   : > { %s312_s16 = scalar_lea.vmem [#allocation2], %s1680_s3  ;;  %s318_s8 = sadd.s32 %s1682_s14, %s1681_s22 }
  0x46   : > { %s321_s27 = sshll.u32 %s312_s16, 4  ;;  %s1683_s5 = sshll.u32 %s318_s8, 7  ;;  %s2709_s27 = int_to_ptr.vmem [resolvable:$true] %s321_s27 }
  0x47   : > { %s2707_s7 = scalar_select %p51_p13, %s2506_s29, %s53_s26  }
  0x48   : > { %p2715_p0 = pnand %p2134_p12, %p2694_p10  ;;  %s3279_s0 = sld [smem:[#allocation23_spill]] }
  0x49   : > { %s2724_s3 = scalar_lea.sflag [#allocation3], %s308_s21 }
  0x4a   : > { %p2304_p5 = pneg %p2715_p0 }
  0x4e   : > { %s2722_s18 = scalar_lea.hbm %s3279_s0, %s1683_s5  ;;  %s2307_s14 = scalar_lea.hbm %s3279_s0, 8192 }
  0x4f   : > { %s2302_s8 = scalar_lea.hbm %s2722_s18, 2048  ;;  %p2308_p1 = scmp.lt.u32.totalorder %s2722_s18, %s3279_s0 }
  0x50   : > { %p2303_p3 = scmp.ne.s32.totalorder %s2722_s18, %s2302_s8  ;;  %p2309_p2 = scmp.lt.u32.totalorder %s2307_s14, %s2302_s8 }
  0x51   : > { %p2311_p6 = scmp.lt.u32.totalorder %s2302_s8, %s2722_s18 }
  0x52   : > { %p2305_p7 = pnand %p2304_p5, %p2303_p3  ;;  %p2310_p4 = por %p2309_p2, %p2308_p1 }
  0x54   : > { %p2306_p9 = pneg %p2305_p7  ;;  %p2312_p8 = por %p2311_p6, %p2310_p4 }
  0x56   : > { %p2313_p10 = pnand %p2312_p8, %p2306_p9 }
  0x58   : > { %2316 = shalt.err (!%p2313_p10)
}
  0x59   : > { %s2317_s26 = scalar_lea.vmem %s2709_s27, 2048  ;;  %s2531_s19 = smov [#allocation2]  }
  0x5a   : > { %p2318_p12 = scmp.ne.s32.totalorder %s2709_s27, %s2317_s26  ;;  %s2322_s21 = sshll.u32 %s2531_s19, 4  ;;  %s2323_s21 = int_to_ptr.vmem [resolvable:$false] %s2322_s21 }
  0x5b   : > { %s2324_s22 = scalar_lea.vmem %s2323_s21, 4096  ;;  %p2325_p7 = scmp.lt.s32.totalorder %s2709_s27, %s2323_s21 }
  0x5c   : > { %p2320_p13 = pnand %p2318_p12, %p2304_p5  ;;  %p2326_p1 = scmp.lt.s32.totalorder %s2324_s22, %s2317_s26 }
  0x5e   : > { %p2321_p3 = pneg %p2320_p13  ;;  %p2327_p2 = por %p2326_p1, %p2325_p7 }
  0x60   : > { %p2328_p4 = pnand %p2327_p2, %p2321_p3 }
  0x62   : > { %2331 = shalt.err (!%p2328_p4)
}
  0x63   : > { %s2532_s23 = smov 128   ;;  %s2533_s24 = smov 8  }
  0x64   : > { %2119 = dma.hbm_to_vmem [thread:$0]  (!%p2715_p0), %s2722_s18, 2048, %s2709_s27, %s2724_s3, %s2532_s23, %s2532_s23, %s2533_s24  }
  0x65   : > { %p3280_p5 = scmp.ne.s32.totalorder %s3270_s17, 0 }
  0x66   : > { %s2755_s8 = sand.u32 (!%p3280_p5), 1, %s2502_s28   ;;  %p3281_p9 = scmp.ne.s32.totalorder (!%p3280_p5), %s3267_s15, 0 }
  0x67   : > { %333 = sbr.rel (%p3280_p5) target bundleno = 856 (0x358), region = 40  ;;  %s1685_s16 = sshll.u32 (!%p3280_p5), %s2755_s8, 7 }
  0x68   : > { %s336_s10 = scalar_lea.sflag (!%p3280_p5), [#allocation3], %s2755_s8  ;;  %s2759_s14 = scalar_lea.vmem (!%p3280_p5), [#allocation2], %s1685_s16 }
  0x6e   : > { %2477 = dma.done.wait (%p3281_p9), %s336_s10, 2048  }
  0x6f   : > { %2479 = vsyncadd (%p3281_p9), %s336_s10, 4294965248  ;;  %p3282_p0 = scmp.eq.s32.totalorder %s2628_s13, 0 }
  0x71   : > { %2481 = dma.done.wait (%p3282_p0), [#allocation6], 3072   ;;  %p3283_p6 = pmov %p3282_p0 }
  0x72   : > { %v396_v0 = vld [vmem:[%s2759_s14] sm:$0xff]  ;;  %v398_v1 = vld [vmem:[%s2759_s14 + $0x10] sm:$0xff]  ;;  %v397_v2 = vld [vmem:[%s2759_s14 + $0x8] sm:$0xff]  ;;  %s3284_s1 = sld [smem:[#allocation24_spill]]  ;;  %s2901_s18 = sshll.u32 %s2755_s8, 6 }
  0x73   : > { %2483 = vsyncadd (%p3283_p6), [#allocation6], 4294964224  ;;  %412 = vadd.xlane.f32.xlu0 %v396_v0  ;;  %416 = vadd.xlane.f32.xlu1 %v398_v1  ;;  %v399_v3 = vld [vmem:[%s2759_s14 + $0x18] sm:$0xff]  ;;  %v400_v4 = vld [vmem:[%s2759_s14 + $0x20] sm:$0xff]  ;;  %s2912_s3 = scalar_lea.vmem [#allocation7], %s2901_s18  ;;  %s2983_s26 = scalar_lea.vmem [#allocation8], %s2901_s18 }
  0x74   : > { %v401_v5 = vld [vmem:[%s2759_s14 + $0x28] sm:$0xff]  ;;  %v402_v6 = vld [vmem:[%s2759_s14 + $0x30] sm:$0xff]  ;;  %v2777_v7 = vld [vmem:[%s2759_s14 + $0x38] sm:$0xff]  ;;  %s2989_s19 = scalar_lea.vmem [#allocation11], %s2901_s18  ;;  %s1439_s21 = sshll.u32 %s2983_s26, 4  ;;  %s3047_s21 = int_to_ptr.vmem [resolvable:$true] %s1439_s21 }
  0x75   : > { %v2780_v8 = vld [vmem:[%s2759_s14 + $0x40] sm:$0xff]  ;;  %v2783_v9 = vld [vmem:[%s2759_s14 + $0x48] sm:$0xff]  ;;  %v2789_v10 = vld [vmem:[%s2759_s14 + $0x50] sm:$0xff]  ;;  %s1785_s22 = sshll.u32 %s2510_s30, 4  ;;  %s3257_s23 = sshll.u32 %s2514_s9, 5 }
  0x76   : > { %v2792_v11 = vld [vmem:[%s2759_s14 + $0x58] sm:$0xff]  ;;  %v2797_v12 = vld [vmem:[%s2759_s14 + $0x60] sm:$0xff]  ;;  %v2800_v13 = vld [vmem:[%s2759_s14 + $0x68] sm:$0xff]  ;;  %s1418_s24 = sadd.s32 %s3257_s23, %s1785_s22  ;;  %s1395_s16 = sand.u32 1, %s2628_s13  }
  0x77   : > { %414 = vadd.xlane.f32.xlu0 %v397_v2  ;;  %418 = vadd.xlane.f32.xlu1 %v399_v3  ;;  %v2805_v14 = vld [vmem:[%s2759_s14 + $0x70] sm:$0xff]  ;;  %v2808_v15 = vld [vmem:[%s2759_s14 + $0x78] sm:$0xff]  ;;  %v2212_v17 = vld [vmem:[#allocation5] ss:$12 sps:$4 sm:$0xff]   ;;  %s3052_s10 = sshll.u32 %s1418_s24, 6  ;;  %s3285_s27 = sld [smem:[#allocation27_spill]] }
  0x78   : > { %v2210_v16 = vld [vmem:[#allocation5 + $0x4] ss:$12 sps:$4 sm:$0xff]   ;;  %v2213_v18 = vld [vmem:[#allocation5 + $0x1c] ss:$12 sps:$4 sm:$0xff]   ;;  %s3060_s5 = scalar_lea.sflag [#allocation9], %s1395_s16  ;;  %s2332_s25 = scalar_lea.vmem %s3047_s21, 1024 }
  0x79   : > { %v2215_v19 = vld [vmem:[#allocation5 + $0x8] ss:$12 sps:$4 sm:$0xff]   ;;  %892 = vmatprep.subr.bf16.mxu0 %v2210_v16  ;;  %v2216_v58 = vld [vmem:[#allocation5 + $0x18] ss:$12 sps:$4 sm:$0xff]   ;;  %p2333_p8 = scmp.ne.s32.totalorder %s3047_s21, %s2332_s25 }
  0x7a   : > { %893 = vmatpush1.bf16.msra.mxu0 %v2212_v17  ;;  %2066 = vmatprep.subr.bf16.mxu1 %v2215_v19 }
  0x7b   : > { %420 = vadd.xlane.f32.xlu0 %v400_v4  ;;  %422 = vadd.xlane.f32.xlu1 %v401_v5  ;;  %p2334_p10 = pnand %p2333_p8, %p2690_p11 }
  0x7c   : > { %894 = vmatprep.subr.bf16.mxu0 %v2213_v18  ;;  %2067 = vmatpush3.bf16.msra.mxu1 %v2215_v19  ;;  %v2221_v18 = vld [vmem:[#allocation5 + $0x4c] ss:$12 sps:$4 sm:$0xff]  }
  0x7d   : > { %v2223_v19 = vld [vmem:[#allocation5 + $0x38] ss:$12 sps:$4 sm:$0xff]   ;;  %s3286_s15 = smov %s3285_s27  ;;  %s3058_s17 = scalar_lea.hbm %s3285_s27, %s3052_s10 }
  0x7e   : > { %895 = vmatpush1.bf16.msra.mxu0 %v2216_v58  ;;  %p2335_p12 = pneg %p2334_p10 }
  0x7f   : > { %424 = vadd.xlane.f32.xlu0 %v402_v6  ;;  %426 = vadd.xlane.f32.xlu1 %v2777_v7 }
  0x83   : > { %428 = vadd.xlane.f32.xlu0 %v2780_v8  ;;  %430 = vadd.xlane.f32.xlu1 %v2783_v9 }
  0x87   : > { %432 = vadd.xlane.f32.xlu0 %v2789_v10  ;;  %434 = vadd.xlane.f32.xlu1 %v2792_v11 }
  0x8b   : > { %436 = vadd.xlane.f32.xlu0 %v2797_v12  ;;  %438 = vadd.xlane.f32.xlu1 %v2800_v13 }
  0x8f   : > { %440 = vadd.xlane.f32.xlu0 %v2805_v14  ;;  %442 = vadd.xlane.f32.xlu1 %v2808_v15 }
 0x100   : > { %v413_v20 = vpop.xlane.xlu0 %412  ;;  %v417_v21 = vpop.xlane.xlu1 %416 }
 0x101   : > { %v445_v22 = vmul.f32 0.0078125, %v413_v20  ;;  %v447_v23 = vmul.f32 0.0078125, %v417_v21 }
 0x103   : > { %v2812_v24 = vsub.f32 %v396_v0, %v445_v22  ;;  %v2814_v25 = vsub.f32 %v398_v1, %v447_v23  ;;  %v2217_v0 = vld [vmem:[#allocation5 + $0x34] ss:$12 sps:$4 sm:$0xff]  }
 0x104   : > { %v415_v26 = vpop.xlane.xlu0 %414  ;;  %v419_v27 = vpop.xlane.xlu1 %418  ;;  %v2219_v1 = vld [vmem:[#allocation5 + $0x20] ss:$12 sps:$4 sm:$0xff]   ;;  %896 = vmatprep.subr.bf16.mxu0 %v2217_v0  ;;  %v2224_v22 = vld [vmem:[#allocation5 + $0x48] ss:$12 sps:$4 sm:$0xff]  }
 0x105   : > { %v446_v28 = vmul.f32 0.0078125, %v415_v26  ;;  %v477_v29 = vmul.f32 %v2812_v24, %v2812_v24  ;;  %v448_v30 = vmul.f32 0.0078125, %v419_v27  ;;  %v479_v33 = vmul.f32 %v2814_v25, %v2814_v25  ;;  %2068 = vmatprep.subr.bf16.mxu1 %v2219_v1 }
 0x106   : > { %2069 = vmatpush3.bf16.msra.mxu1 %v2219_v1 }
 0x107   : > { %v2818_v31 = vsub.f32 %v397_v2, %v446_v28  ;;  %493 = vadd.xlane.f32.xlu0 %v477_v29  ;;  %v2820_v32 = vsub.f32 %v399_v3, %v448_v30  ;;  %2070 = vmatprep.subr.bf16.mxu1 %v2223_v19  ;;  %v2225_v29 = vld [vmem:[#allocation5 + $0x64] ss:$12 sps:$4 sm:$0xff]  }
 0x108   : > { %v421_v34 = vpop.xlane.xlu0 %420  ;;  %v423_v35 = vpop.xlane.xlu1 %422  ;;  %v2227_v30 = vld [vmem:[#allocation5 + $0x50] ss:$12 sps:$4 sm:$0xff]  }
 0x109   : > { %v449_v36 = vmul.f32 0.0078125, %v421_v34  ;;  %v478_v37 = vmul.f32 %v2818_v31, %v2818_v31  ;;  %v450_v38 = vmul.f32 0.0078125, %v423_v35  ;;  %v480_v41 = vmul.f32 %v2820_v32, %v2820_v32  ;;  %v2231_v35 = vld [vmem:[#allocation5 + $0x68] ss:$12 sps:$4 sm:$0xff]  }
 0x10a   : > { %2071 = vmatpush3.bf16.msra.mxu1 %v2223_v19 }
 0x10b   : > { %v2826_v39 = vsub.f32 %v400_v4, %v449_v36  ;;  %497 = vadd.xlane.f32.xlu0 %v479_v33  ;;  %495 = vadd.xlane.f32.xlu1 %v478_v37  ;;  %v2828_v40 = vsub.f32 %v401_v5, %v450_v38  ;;  %v2228_v33 = vld [vmem:[#allocation5 + $0x60] ss:$12 sps:$4 sm:$0xff]   ;;  %v2232_v36 = vld [vmem:[#allocation5 + $0x78] ss:$12 sps:$4 sm:$0xff]  }
 0x10c   : > { %v425_v42 = vpop.xlane.xlu0 %424  ;;  %v427_v43 = vpop.xlane.xlu1 %426  ;;  %2072 = vmatprep.subr.bf16.mxu1 %v2227_v30  ;;  %v2233_v37 = vld [vmem:[#allocation5 + $0x94] ss:$12 sps:$4 sm:$0xff]  }
 0x10d   : > { %v451_v44 = vmul.f32 0.0078125, %v425_v42  ;;  %v481_v45 = vmul.f32 %v2826_v39, %v2826_v39  ;;  %v452_v46 = vmul.f32 0.0078125, %v427_v43  ;;  %v482_v49 = vmul.f32 %v2828_v40, %v2828_v40  ;;  %v2235_v38 = vld [vmem:[#allocation5 + $0x80] ss:$12 sps:$4 sm:$0xff]   ;;  %v2239_v43 = vld [vmem:[#allocation5 + $0x98] ss:$12 sps:$4 sm:$0xff]  }
 0x10e   : > { %2073 = vmatpush3.bf16.msra.mxu1 %v2227_v30  ;;  %v2237_v42 = vld [vmem:[#allocation5 + $0xac] ss:$12 sps:$4 sm:$0xff]  }
 0x10f   : > { %v2834_v47 = vsub.f32 %v402_v6, %v451_v44  ;;  %499 = vadd.xlane.f32.xlu1 %v480_v41  ;;  %501 = vadd.xlane.f32.xlu0 %v481_v45  ;;  %v2837_v48 = vsub.f32 %v2777_v7, %v452_v46  ;;  %v2220_v7 = vld [vmem:[#allocation5 + $0x30] ss:$12 sps:$4 sm:$0xff]   ;;  %v2240_v44 = vld [vmem:[#allocation5 + $0xa8] ss:$12 sps:$4 sm:$0xff]   ;;  %v2534_v46 = vmov 0  }
 0x110   : > { %v429_v50 = vpop.xlane.xlu0 %428  ;;  %v431_v51 = vpop.xlane.xlu1 %430  ;;  %897 = vmatpush1.bf16.msra.mxu0 %v2220_v7  ;;  %2074 = vmatprep.subr.bf16.mxu1 %v2231_v35  ;;  %v2236_v41 = vld [vmem:[#allocation5 + $0x90] ss:$12 sps:$4 sm:$0xff]  }
 0x111   : > { %v453_v52 = vmul.f32 0.0078125, %v429_v50  ;;  %v483_v53 = vmul.f32 %v2834_v47, %v2834_v47  ;;  %v454_v54 = vmul.f32 0.0078125, %v431_v51  ;;  %v484_v57 = vmul.f32 %v2837_v48, %v2837_v48  ;;  %898 = vmatprep.subr.bf16.mxu0 %v2221_v18  ;;  %v2241_v45 = vld [vmem:[#allocation5 + $0xb0] ss:$12 sps:$4 sm:$0xff]   ;;  %924 = vmatprep.mubr.bf16.mxu0 %v2534_v46 }
 0x112   : > { %2075 = vmatpush3.bf16.msra.mxu1 %v2231_v35 }
 0x113   : > { %v2844_v55 = vsub.f32 %v2780_v8, %v453_v52  ;;  %503 = vadd.xlane.f32.xlu1 %v482_v49  ;;  %505 = vadd.xlane.f32.xlu0 %v483_v53  ;;  %v2847_v56 = vsub.f32 %v2783_v9, %v454_v54 }
 0x114   : > { %v433_v59 = vpop.xlane.xlu0 %432  ;;  %v435_v60 = vpop.xlane.xlu1 %434  ;;  %899 = vmatpush1.bf16.msra.mxu0 %v2224_v22  ;;  %2076 = vmatprep.subr.bf16.mxu1 %v2235_v38  ;;  %v2890_v22 = vld [vmem:[%s3284_s1] ss:$0 sm:$0xff] }
 0x115   : > { %v455_v61 = vmul.f32 0.0078125, %v433_v59  ;;  %v485_v62 = vmul.f32 %v2844_v55, %v2844_v55  ;;  %v456_v63 = vmul.f32 0.0078125, %v435_v60  ;;  %v486_v4 = vmul.f32 %v2847_v56, %v2847_v56  ;;  %900 = vmatprep.subr.bf16.mxu0 %v2225_v29 }
 0x116   : > { %2077 = vmatpush3.bf16.msra.mxu1 %v2235_v38 }
 0x117   : > { %v2854_v2 = vsub.f32 %v2789_v10, %v455_v61  ;;  %507 = vadd.xlane.f32.xlu1 %v484_v57  ;;  %509 = vadd.xlane.f32.xlu0 %v485_v62  ;;  %v2857_v3 = vsub.f32 %v2792_v11, %v456_v63 }
 0x118   : > { %v437_v5 = vpop.xlane.xlu0 %436  ;;  %v439_v6 = vpop.xlane.xlu1 %438  ;;  %901 = vmatpush1.bf16.msra.mxu0 %v2228_v33  ;;  %2078 = vmatprep.subr.bf16.mxu1 %v2239_v43 }
 0x119   : > { %v457_v8 = vmul.f32 0.0078125, %v437_v5  ;;  %v487_v9 = vmul.f32 %v2854_v2, %v2854_v2  ;;  %v458_v16 = vmul.f32 0.0078125, %v439_v6  ;;  %v488_v17 = vmul.f32 %v2857_v3, %v2857_v3 }
 0x11a   : > { %2079 = vmatpush3.bf16.msra.mxu1 %v2239_v43 }
 0x11b   : > { %v2864_v10 = vsub.f32 %v2797_v12, %v457_v8  ;;  %511 = vadd.xlane.f32.xlu1 %v486_v4  ;;  %513 = vadd.xlane.f32.xlu0 %v487_v9  ;;  %v2867_v11 = vsub.f32 %v2800_v13, %v458_v16 }
 0x11c   : > { %v441_v20 = vpop.xlane.xlu0 %440  ;;  %v443_v21 = vpop.xlane.xlu1 %442  ;;  %2080 = vmatprep.subr.bf16.mxu1 %v2241_v45 }
 0x11d   : > { %v459_v23 = vmul.f32 0.0078125, %v441_v20  ;;  %v489_v26 = vmul.f32 %v2864_v10, %v2864_v10  ;;  %v460_v27 = vmul.f32 0.0078125, %v443_v21  ;;  %v490_v28 = vmul.f32 %v2867_v11, %v2867_v11 }
 0x11e   : > { %2081 = vmatpush3.bf16.msra.mxu1 %v2241_v45 }
 0x11f   : > { %v2874_v12 = vsub.f32 %v2805_v14, %v459_v23  ;;  %515 = vadd.xlane.f32.xlu1 %v488_v17  ;;  %517 = vadd.xlane.f32.xlu0 %v489_v26  ;;  %v2877_v13 = vsub.f32 %v2808_v15, %v460_v27  ;;  %v2229_v15 = vld [vmem:[#allocation5 + $0x7c] ss:$12 sps:$4 sm:$0xff]  }
 0x120   : > { %902 = vmatprep.subr.bf16.mxu0 %v2229_v15  ;;  %v2897_v15 = vld [vmem:[%s3237_s2] ss:$0 sm:$0xff] }
 0x121   : > { %v491_v34 = vmul.f32 %v2874_v12, %v2874_v12  ;;  %v492_v14 = vmul.f32 %v2877_v13, %v2877_v13  ;;  %903 = vmatpush1.bf16.msra.mxu0 %v2232_v36 }
 0x122   : > { %904 = vmatprep.subr.bf16.mxu0 %v2233_v37 }
 0x123   : > { %519 = vadd.xlane.f32.xlu1 %v490_v28  ;;  %521 = vadd.xlane.f32.xlu0 %v491_v34 }
 0x125   : > { %905 = vmatpush1.bf16.msra.mxu0 %v2236_v41 }
 0x126   : > { %906 = vmatprep.subr.bf16.mxu0 %v2237_v42 }
 0x127   : > { %523 = vadd.xlane.f32.xlu1 %v492_v14 }
 0x129   : > { %907 = vmatpush1.bf16.msra.mxu0 %v2240_v44 }
 0x194   : > { %v494_v49 = vpop.xlane.xlu0 %493 }
 0x195   : > { %v525_v50 = vmul.f32 0.0078125, %v494_v49 }
 0x197   : > { %v541_v51 = vadd.f32 1e-05, %v525_v50 }
 0x198   : > { %v496_v52 = vpop.xlane.xlu1 %495  ;;  %v498_v53 = vpop.xlane.xlu0 %497 }
 0x199   : > { %2242 = vrsqrt.f32 %v541_v51  ;;  %v526_v54 = vmul.f32 0.0078125, %v496_v52  ;;  %v527_v57 = vmul.f32 0.0078125, %v498_v53 }
 0x19b   : > { %v542_v58 = vadd.f32 1e-05, %v526_v54  ;;  %v543_v59 = vadd.f32 1e-05, %v527_v57 }
 0x19c   : > { %v500_v60 = vpop.xlane.xlu1 %499  ;;  %v502_v61 = vpop.xlane.xlu0 %501 }
 0x19d   : > { %2244 = vrsqrt.f32 %v542_v58  ;;  %v528_v62 = vmul.f32 0.0078125, %v500_v60  ;;  %v529_v63 = vmul.f32 0.0078125, %v502_v61 }
 0x19e   : > { %2246 = vrsqrt.f32 %v543_v59 }
 0x19f   : > { %v544_v0 = vadd.f32 1e-05, %v528_v62  ;;  %v545_v1 = vadd.f32 1e-05, %v529_v63 }
 0x1a0   : > { %v504_v4 = vpop.xlane.xlu1 %503  ;;  %v506_v5 = vpop.xlane.xlu0 %505 }
 0x1a1   : > { %2248 = vrsqrt.f32 %v544_v0  ;;  %v530_v6 = vmul.f32 0.0078125, %v504_v4  ;;  %v531_v7 = vmul.f32 0.0078125, %v506_v5 }
 0x1a2   : > { %2250 = vrsqrt.f32 %v545_v1 }
 0x1a3   : > { %v2243_v8 = vpop.eup %2242  ;;  %v546_v9 = vadd.f32 1e-05, %v530_v6  ;;  %v547_v16 = vadd.f32 1e-05, %v531_v7 }
 0x1a4   : > { %v508_v17 = vpop.xlane.xlu1 %507  ;;  %v510_v18 = vpop.xlane.xlu0 %509  ;;  %v573_v19 = vmul.f32 %v2243_v8, %v2812_v24 }
 0x1a5   : > { %2252 = vrsqrt.f32 %v546_v9  ;;  %v532_v20 = vmul.f32 0.0078125, %v508_v17  ;;  %v533_v21 = vmul.f32 0.0078125, %v510_v18 }
 0x1a6   : > { %2254 = vrsqrt.f32 %v547_v16  ;;  %v596_v24 = vmul.f32 %v2890_v22, %v573_v19 }
 0x1a7   : > { %v2245_v23 = vpop.eup %2244  ;;  %v548_v26 = vadd.f32 1e-05, %v532_v20  ;;  %v549_v27 = vadd.f32 1e-05, %v533_v21 }
 0x1a8   : > { %v2247_v28 = vpop.eup %2246  ;;  %v512_v29 = vpop.xlane.xlu1 %511  ;;  %v574_v33 = vmul.f32 %v2245_v23, %v2818_v31  ;;  %v619_v45 = vadd.f32 %v2897_v15, %v596_v24 }
 0x1a9   : > { %v514_v30 = vpop.xlane.xlu0 %513  ;;  %2256 = vrsqrt.f32 %v548_v26  ;;  %v534_v34 = vmul.f32 0.0078125, %v512_v29  ;;  %v575_v35 = vmul.f32 %v2247_v28, %v2814_v25 }
 0x1aa   : > { %v535_v14 = vmul.f32 0.0078125, %v514_v30  ;;  %2258 = vrsqrt.f32 %v549_v27  ;;  %v597_v36 = vmul.f32 %v2890_v22, %v574_v33 }
 0x1ab   : > { %v2249_v37 = vpop.eup %2248  ;;  %v550_v38 = vadd.f32 1e-05, %v534_v34  ;;  %v598_v41 = vmul.f32 %v2890_v22, %v575_v35 }
 0x1ac   : > { %v551_v31 = vadd.f32 1e-05, %v535_v14  ;;  %v2251_v42 = vpop.eup %2250  ;;  %v516_v43 = vpop.xlane.xlu1 %515  ;;  %v620_v49 = vadd.f32 %v2897_v15, %v597_v36  ;;  %v576_v25 = vmul.f32 %v2249_v37, %v2820_v32 }
 0x1ad   : > { %v518_v44 = vpop.xlane.xlu0 %517  ;;  %2260 = vrsqrt.f32 %v550_v38  ;;  %v536_v50 = vmul.f32 0.0078125, %v516_v43  ;;  %v577_v54 = vmul.f32 %v2251_v42, %v2826_v39  ;;  %v621_v60 = vadd.f32 %v2897_v15, %v598_v41 }
 0x1ae   : > { %v537_v51 = vmul.f32 0.0078125, %v518_v44  ;;  %2262 = vrsqrt.f32 %v551_v31  ;;  %v635_v52 = vpack.c.bf16 %v620_v49, %v619_v45  ;;  %v599_v53 = vmul.f32 %v2890_v22, %v576_v25 }
 0x1af   : > { %v2253_v57 = vpop.eup %2252  ;;  %v552_v58 = vadd.f32 1e-05, %v536_v50  ;;  %v600_v39 = vmul.f32 %v2890_v22, %v577_v54 }
 0x1b0   : > { %v553_v59 = vadd.f32 1e-05, %v537_v51  ;;  %v2255_v61 = vpop.eup %2254  ;;  %v520_v62 = vpop.xlane.xlu1 %519  ;;  %1866 = vst [vmem:[%s2912_s3] sm:$0xff] %v635_v52   ;;  %925 = vmatmul.mubr.bf16.vlgmr.msra.gmra.mrb[0].mxu0 %v635_v52  ;;  %2082 = vmatprep.mubr.bf16.mxu1 %v635_v52  ;;  %v622_v63 = vadd.f32 %v2897_v15, %v599_v53  ;;  %v578_v0 = vmul.f32 %v2253_v57, %v2828_v40 }
 0x1b1   : > { %v522_v32 = vpop.xlane.xlu0 %521  ;;  %2264 = vrsqrt.f32 %v552_v58  ;;  %v538_v1 = vmul.f32 0.0078125, %v520_v62  ;;  %934 = vmatprep.mubr.bf16.mxu0 %v2534_v46  ;;  %v579_v5 = vmul.f32 %v2255_v61, %v2834_v47  ;;  %v623_v19 = vadd.f32 %v2897_v15, %v600_v39 }
 0x1b2   : > { %v539_v4 = vmul.f32 0.0078125, %v522_v32  ;;  %2266 = vrsqrt.f32 %v553_v59  ;;  %v636_v6 = vpack.c.bf16 %v622_v63, %v621_v60  ;;  %v601_v7 = vmul.f32 %v2890_v22, %v578_v0 }
 0x1b3   : > { %v2257_v8 = vpop.eup %2256  ;;  %v554_v9 = vadd.f32 1e-05, %v538_v1  ;;  %v602_v17 = vmul.f32 %v2890_v22, %v579_v5 }
 0x1b4   : > { %v555_v16 = vadd.f32 1e-05, %v539_v4  ;;  %v2259_v40 = vpop.eup %2258  ;;  %v524_v18 = vpop.xlane.xlu1 %523  ;;  %2022 = vst [vmem:[%s2912_s3 + $0x8] sm:$0xff] %v636_v6   ;;  %2083 = vmatmul.mubr.bf16.vlgmr.msra.gmra.mrb[0].mxu1 %v636_v6  ;;  %v624_v20 = vadd.f32 %v2897_v15, %v601_v7  ;;  %v580_v47 = vmul.f32 %v2257_v8, %v2837_v48 }
 0x1b5   : > { %2268 = vrsqrt.f32 %v554_v9  ;;  %v540_v21 = vmul.f32 0.0078125, %v524_v18  ;;  %v581_v23 = vmul.f32 %v2259_v40, %v2844_v55  ;;  %v625_v30 = vadd.f32 %v2897_v15, %v602_v17 }
 0x1b6   : > { %2270 = vrsqrt.f32 %v555_v16  ;;  %v637_v26 = vpack.c.bf16 %v624_v20, %v623_v19  ;;  %v603_v27 = vmul.f32 %v2890_v22, %v580_v47 }
 0x1b7   : > { %v2261_v28 = vpop.eup %2260  ;;  %v556_v29 = vadd.f32 1e-05, %v540_v21  ;;  %v604_v34 = vmul.f32 %v2890_v22, %v581_v23 }
 0x1b8   : > { %v2263_v33 = vpop.eup %2262  ;;  %935 = vmatmul.mubr.bf16.gmra.mrb[4].mxu0 %v636_v6  ;;  %2023 = vst [vmem:[%s2912_s3 + $0x10] sm:$0xff] %v637_v26   ;;  %2086 = vmatprep.mubr.bf16.mxu1 %v637_v26  ;;  %v626_v24 = vadd.f32 %v2897_v15, %v603_v27  ;;  %v582_v48 = vmul.f32 %v2261_v28, %v2847_v56 }
 0x1b9   : > { %2272 = vrsqrt.f32 %v556_v29  ;;  %944 = vmatprep.mubr.bf16.mxu0 %v2534_v46  ;;  %v583_v55 = vmul.f32 %v2263_v33, %v2854_v2  ;;  %v627_v31 = vadd.f32 %v2897_v15, %v604_v34 }
 0x1ba   : > { %v638_v14 = vpack.c.bf16 %v626_v24, %v625_v30  ;;  %v605_v35 = vmul.f32 %v2890_v22, %v582_v48 }
 0x1bb   : > { %v2265_v36 = vpop.eup %2264  ;;  %v606_v37 = vmul.f32 %v2890_v22, %v583_v55 }
 0x1bc   : > { %v2267_v38 = vpop.eup %2266  ;;  %2024 = vst [vmem:[%s2912_s3 + $0x18] sm:$0xff] %v638_v14   ;;  %2087 = vmatmul.mubr.bf16.gmra.mrb[4].mxu1 %v638_v14  ;;  %v628_v56 = vadd.f32 %v2897_v15, %v605_v35  ;;  %v584_v41 = vmul.f32 %v2265_v36, %v2857_v3 }
 0x1bd   : > { %v585_v42 = vmul.f32 %v2267_v38, %v2864_v10  ;;  %v629_v45 = vadd.f32 %v2897_v15, %v606_v37 }
 0x1be   : > { %v639_v43 = vpack.c.bf16 %v628_v56, %v627_v31  ;;  %v607_v2 = vmul.f32 %v2890_v22, %v584_v41 }
 0x1bf   : > { %v2269_v44 = vpop.eup %2268  ;;  %v608_v3 = vmul.f32 %v2890_v22, %v585_v42 }
 0x1c0   : > { %v2271_v49 = vpop.eup %2270  ;;  %945 = vmatmul.mubr.bf16.gmra.mrb[8].mxu0 %v637_v26  ;;  %2025 = vst [vmem:[%s2912_s3 + $0x20] sm:$0xff] %v639_v43   ;;  %2090 = vmatprep.mubr.bf16.mxu1 %v639_v43  ;;  %v630_v25 = vadd.f32 %v2897_v15, %v607_v2  ;;  %v586_v50 = vmul.f32 %v2269_v44, %v2867_v11 }
 0x1c1   : > { %954 = vmatprep.mubr.bf16.mxu0 %v2534_v46  ;;  %v587_v10 = vmul.f32 %v2271_v49, %v2874_v12  ;;  %v631_v54 = vadd.f32 %v2897_v15, %v608_v3 }
 0x1c2   : > { %v640_v51 = vpack.c.bf16 %v630_v25, %v629_v45  ;;  %v609_v52 = vmul.f32 %v2890_v22, %v586_v50 }
 0x1c3   : > { %v2273_v53 = vpop.eup %2272  ;;  %v610_v58 = vmul.f32 %v2890_v22, %v587_v10 }
 0x1c4   : > { %2026 = vst [vmem:[%s2912_s3 + $0x28] sm:$0xff] %v640_v51   ;;  %2091 = vmatmul.mubr.bf16.gmra.mrb[8].mxu1 %v640_v51  ;;  %v632_v57 = vadd.f32 %v2897_v15, %v609_v52  ;;  %v588_v11 = vmul.f32 %v2273_v53, %v2877_v13  ;;  %v749_v13 = vlaneseq }
 0x1c5   : > { %v633_v12 = vadd.f32 %v2897_v15, %v610_v58 }
 0x1c6   : > { %v641_v59 = vpack.c.bf16 %v632_v57, %v631_v54  ;;  %v611_v60 = vmul.f32 %v2890_v22, %v588_v11  ;;  %v750_v22 = vshrl.u32 %v749_v13, 7 }
 0x1c8   : > { %955 = vmatmul.mubr.bf16.gmra.mrb[12].mxu0 %v638_v14  ;;  %2027 = vst [vmem:[%s2912_s3 + $0x30] sm:$0xff] %v641_v59   ;;  %2094 = vmatprep.mubr.bf16.mxu1 %v641_v59  ;;  %v634_v61 = vadd.f32 %v2897_v15, %v611_v60  ;;  %v751_v32 = vsub.s32 0, %v750_v22  ;;  %v747_v15 = vld [vmem:[%s3239_s4] sm:$0x7]  ;;  %v755_v63 = vsub.s32 1, %v750_v22  ;;  %v759_v1 = vsub.s32 2, %v750_v22 }
 0x1c9   : > { %964 = vmatprep.mubr.bf16.mxu0 %v2534_v46 }
 0x1ca   : > { %v642_v62 = vpack.c.bf16 %v634_v61, %v633_v12  ;;  %v2968_v0 = vrot.slane %v747_v15, %v751_v32  ;;  %v2970_v39 = vrot.slane %v747_v15, %v755_v63  ;;  %v2975_v16 = vrot.slane %v747_v15, %v759_v1 }
 0x1cc   : > { %2028 = vst [vmem:[%s2912_s3 + $0x38] sm:$0xff] %v642_v62   ;;  %2095 = vmatmul.mubr.bf16.gmra.mrb[12].mxu1 %v642_v62 }
 0x1d0   : > { %965 = vmatmul.mubr.bf16.gmra.mrb[16].mxu0 %v639_v43 }
 0x1d1   : > { %974 = vmatprep.mubr.bf16.mxu0 %v2534_v46 }
 0x1d8   : > { %975 = vmatmul.mubr.bf16.gmra.mrb[20].mxu0 %v640_v51 }
 0x1d9   : > { %984 = vmatprep.mubr.bf16.mxu0 %v2534_v46 }
 0x1e0   : > { %985 = vmatmul.mubr.bf16.gmra.mrb[24].mxu0 %v641_v59 }
 0x1e1   : > { %994 = vmatprep.mubr.bf16.mxu0 %v2534_v46 }
 0x1e8   : > { %995 = vmatmul.mubr.bf16.gmra.mrb[28].mxu0 %v642_v62 }
 0x283   : > { %v926_v4 = vpop.f32.mrb[0].mxu0 }
 0x284   : > { %v927_v5 = vadd.f32 %v926_v4, %v2968_v0  ;;  %v928_v6 = vpop.f32.mrb[1].mxu0 }
 0x285   : > { %v929_v46 = vadd.f32 %v928_v6, %v2970_v39  ;;  %v930_v7 = vpop.f32.mrb[2].mxu0 }
 0x286   : > { %v931_v8 = vadd.f32 %v930_v7, %v2968_v0  ;;  %v932_v9 = vpop.f32.mrb[3].mxu0  ;;  %v1102_v40 = vmul.f32 0.088388346, %v927_v5 }
 0x287   : > { %1198 = vxpose.xlu0.b32.start [1/16] %v929_v46, 128  ;;  %v2084_v17 = vpop.f32.mrb[0].mxu1  ;;  %v933_v20 = vadd.f32 %v932_v9, %v2970_v39 }
 0x288   : > { %v1103_v18 = vmul.f32 0.088388346, %v931_v8  ;;  %v1039_v19 = vpop.f32.mrb[1].mxu1  ;;  %v1048_v23 = vadd.f32 %v2084_v17, %v2975_v16 }
 0x289   : > { %v2085_v47 = vpop.f32.mrb[2].mxu1  ;;  %v1040_v28 = vadd.f32 %v1039_v19, %v2975_v16 }
 0x28a   : > { %v1905_v21 = vpack.c.bf16 %v1103_v18, %v1102_v40  ;;  %v1051_v26 = vadd.f32 %v2085_v47, %v2975_v16  ;;  %v1042_v27 = vpop.f32.mrb[3].mxu1 }
 0x28b   : > { %v1043_v29 = vadd.f32 %v1042_v27, %v2975_v16  ;;  %1199 = vxpose.xlu0.b32.cont [2/16] %v933_v20, 128  ;;  %v936_v30 = vpop.f32.mrb[4].mxu0 }
 0x28c   : > { %1906 = vst [vmem:[%s2983_s26] sm:$0xff] %v1905_v21   ;;  %v1990_v33 = vpack.c.bf16 %v1051_v26, %v1048_v23  ;;  %v937_v24 = vadd.f32 %v936_v30, %v2968_v0  ;;  %v938_v48 = vpop.f32.mrb[5].mxu0 }
 0x28d   : > { %v1985_v34 = vpack.c.bf16 %v1043_v29, %v1040_v28  ;;  %v939_v55 = vadd.f32 %v938_v48, %v2970_v39  ;;  %v940_v14 = vpop.f32.mrb[6].mxu0 }
 0x28e   : > { %2043 = vst [vmem:[%s2989_s19 + $0x8] sm:$0xff] %v1990_v33   ;;  %v941_v35 = vadd.f32 %v940_v14, %v2968_v0  ;;  %v942_v36 = vpop.f32.mrb[7].mxu0  ;;  %v1104_v38 = vmul.f32 0.088388346, %v937_v24 }
 0x28f   : > { %1986 = vst [vmem:[%s2989_s19] sm:$0xff] %v1985_v34   ;;  %1200 = vxpose.xlu0.b32.cont [3/16] %v939_v55, 128  ;;  %v2088_v37 = vpop.f32.mrb[4].mxu1  ;;  %v943_v41 = vadd.f32 %v942_v36, %v2970_v39 }
 0x290   : > { %v1105_v31 = vmul.f32 0.088388346, %v941_v35  ;;  %v1055_v56 = vpop.f32.mrb[5].mxu1  ;;  %v1064_v2 = vadd.f32 %v2088_v37, %v2975_v16 }
 0x291   : > { %v2089_v42 = vpop.f32.mrb[6].mxu1  ;;  %v1056_v49 = vadd.f32 %v1055_v56, %v2975_v16 }
 0x292   : > { %v1910_v43 = vpack.c.bf16 %v1105_v31, %v1104_v38  ;;  %v1067_v44 = vadd.f32 %v2089_v42, %v2975_v16  ;;  %v1058_v45 = vpop.f32.mrb[7].mxu1 }
 0x293   : > { %v1059_v25 = vadd.f32 %v1058_v45, %v2975_v16  ;;  %1201 = vxpose.xlu0.b32.cont [4/16] %v943_v41, 128  ;;  %v946_v50 = vpop.f32.mrb[8].mxu0 }
 0x294   : > { %2029 = vst [vmem:[%s2983_s26 + $0x8] sm:$0xff] %v1910_v43   ;;  %v2000_v3 = vpack.c.bf16 %v1067_v44, %v1064_v2  ;;  %v947_v10 = vadd.f32 %v946_v50, %v2968_v0  ;;  %v948_v51 = vpop.f32.mrb[9].mxu0 }
 0x295   : > { %v1995_v52 = vpack.c.bf16 %v1059_v25, %v1056_v49  ;;  %v949_v53 = vadd.f32 %v948_v51, %v2970_v39  ;;  %v950_v54 = vpop.f32.mrb[10].mxu0 }
 0x296   : > { %2045 = vst [vmem:[%s2989_s19 + $0x18] sm:$0xff] %v2000_v3   ;;  %v951_v57 = vadd.f32 %v950_v54, %v2968_v0  ;;  %v952_v11 = vpop.f32.mrb[11].mxu0  ;;  %v1106_v59 = vmul.f32 0.088388346, %v947_v10 }
 0x297   : > { %2044 = vst [vmem:[%s2989_s19 + $0x10] sm:$0xff] %v1995_v52   ;;  %1202 = vxpose.xlu0.b32.cont [5/16] %v949_v53, 128  ;;  %v2092_v58 = vpop.f32.mrb[8].mxu1  ;;  %v953_v61 = vadd.f32 %v952_v11, %v2970_v39 }
 0x298   : > { %v1107_v60 = vmul.f32 0.088388346, %v951_v57  ;;  %v1071_v12 = vpop.f32.mrb[9].mxu1  ;;  %v1080_v22 = vadd.f32 %v2092_v58, %v2975_v16 }
 0x299   : > { %v2093_v62 = vpop.f32.mrb[10].mxu1  ;;  %v1072_v63 = vadd.f32 %v1071_v12, %v2975_v16 }
 0x29a   : > { %v1915_v13 = vpack.c.bf16 %v1107_v60, %v1106_v59  ;;  %v1083_v32 = vadd.f32 %v2093_v62, %v2975_v16  ;;  %v1074_v15 = vpop.f32.mrb[11].mxu1 }
 0x29b   : > { %v1075_v1 = vadd.f32 %v1074_v15, %v2975_v16  ;;  %1203 = vxpose.xlu0.b32.cont [6/16] %v953_v61, 128  ;;  %v956_v4 = vpop.f32.mrb[12].mxu0 }
 0x29c   : > { %2030 = vst [vmem:[%s2983_s26 + $0x10] sm:$0xff] %v1915_v13   ;;  %v2010_v5 = vpack.c.bf16 %v1083_v32, %v1080_v22  ;;  %v957_v6 = vadd.f32 %v956_v4, %v2968_v0  ;;  %v958_v46 = vpop.f32.mrb[13].mxu0 }
 0x29d   : > { %v2005_v7 = vpack.c.bf16 %v1075_v1, %v1072_v63  ;;  %v959_v8 = vadd.f32 %v958_v46, %v2970_v39  ;;  %v960_v9 = vpop.f32.mrb[14].mxu0 }
 0x29e   : > { %2047 = vst [vmem:[%s2989_s19 + $0x28] sm:$0xff] %v2010_v5   ;;  %v961_v17 = vadd.f32 %v960_v9, %v2968_v0  ;;  %v962_v40 = vpop.f32.mrb[15].mxu0  ;;  %v1108_v19 = vmul.f32 0.088388346, %v957_v6 }
 0x29f   : > { %2046 = vst [vmem:[%s2989_s19 + $0x20] sm:$0xff] %v2005_v7   ;;  %1204 = vxpose.xlu0.b32.cont [7/16] %v959_v8, 128  ;;  %v2096_v18 = vpop.f32.mrb[12].mxu1  ;;  %v963_v21 = vadd.f32 %v962_v40, %v2970_v39 }
 0x2a0   : > { %v1109_v20 = vmul.f32 0.088388346, %v961_v17  ;;  %v1087_v47 = vpop.f32.mrb[13].mxu1  ;;  %v1096_v27 = vadd.f32 %v2096_v18, %v2975_v16 }
 0x2a1   : > { %v2097_v23 = vpop.f32.mrb[14].mxu1  ;;  %v1088_v30 = vadd.f32 %v1087_v47, %v2975_v16 }
 0x2a2   : > { %v1920_v26 = vpack.c.bf16 %v1109_v20, %v1108_v19  ;;  %v1099_v28 = vadd.f32 %v2097_v23, %v2975_v16  ;;  %v1090_v29 = vpop.f32.mrb[15].mxu1 }
 0x2a3   : > { %v1091_v33 = vadd.f32 %v1090_v29, %v2975_v16  ;;  %1205 = vxpose.xlu0.b32.cont [8/16] %v963_v21, 128  ;;  %v966_v24 = vpop.f32.mrb[16].mxu0 }
 0x2a4   : > { %2031 = vst [vmem:[%s2983_s26 + $0x18] sm:$0xff] %v1920_v26   ;;  %v2020_v48 = vpack.c.bf16 %v1099_v28, %v1096_v27  ;;  %v967_v34 = vadd.f32 %v966_v24, %v2968_v0  ;;  %v968_v55 = vpop.f32.mrb[17].mxu0 }
 0x2a5   : > { %v2015_v14 = vpack.c.bf16 %v1091_v33, %v1088_v30  ;;  %v969_v35 = vadd.f32 %v968_v55, %v2970_v39  ;;  %v970_v36 = vpop.f32.mrb[18].mxu0 }
 0x2a6   : > { %2049 = vst [vmem:[%s2989_s19 + $0x38] sm:$0xff] %v2020_v48   ;;  %v971_v37 = vadd.f32 %v970_v36, %v2968_v0  ;;  %v972_v38 = vpop.f32.mrb[19].mxu0  ;;  %v1110_v31 = vmul.f32 0.088388346, %v967_v34 }
 0x2a7   : > { %2048 = vst [vmem:[%s2989_s19 + $0x30] sm:$0xff] %v2015_v14   ;;  %1206 = vxpose.xlu0.b32.cont [9/16] %v969_v35, 128  ;;  %v973_v56 = vadd.f32 %v972_v38, %v2970_v39 }
 0x2a8   : > { %v1111_v16 = vmul.f32 0.088388346, %v971_v37 }
 0x2aa   : > { %v1925_v41 = vpack.c.bf16 %v1111_v16, %v1110_v31 }
 0x2ab   : > { %1207 = vxpose.xlu0.b32.cont [10/16] %v973_v56, 128  ;;  %v976_v42 = vpop.f32.mrb[20].mxu0 }
 0x2ac   : > { %2032 = vst [vmem:[%s2983_s26 + $0x20] sm:$0xff] %v1925_v41   ;;  %v977_v43 = vadd.f32 %v976_v42, %v2968_v0  ;;  %v978_v2 = vpop.f32.mrb[21].mxu0 }
 0x2ad   : > { %v979_v44 = vadd.f32 %v978_v2, %v2970_v39  ;;  %v980_v45 = vpop.f32.mrb[22].mxu0 }
 0x2ae   : > { %v981_v49 = vadd.f32 %v980_v45, %v2968_v0  ;;  %v982_v25 = vpop.f32.mrb[23].mxu0  ;;  %v1112_v50 = vmul.f32 0.088388346, %v977_v43 }
 0x2af   : > { %1208 = vxpose.xlu0.b32.cont [11/16] %v979_v44, 128  ;;  %v983_v10 = vadd.f32 %v982_v25, %v2970_v39 }
 0x2b0   : > { %v1113_v3 = vmul.f32 0.088388346, %v981_v49 }
 0x2b2   : > { %v1930_v51 = vpack.c.bf16 %v1113_v3, %v1112_v50 }
 0x2b3   : > { %1209 = vxpose.xlu0.b32.cont [12/16] %v983_v10, 128  ;;  %v986_v52 = vpop.f32.mrb[24].mxu0 }
 0x2b4   : > { %2033 = vst [vmem:[%s2983_s26 + $0x28] sm:$0xff] %v1930_v51   ;;  %v987_v53 = vadd.f32 %v986_v52, %v2968_v0  ;;  %v988_v54 = vpop.f32.mrb[25].mxu0 }
 0x2b5   : > { %v989_v57 = vadd.f32 %v988_v54, %v2970_v39  ;;  %v990_v11 = vpop.f32.mrb[26].mxu0 }
 0x2b6   : > { %v991_v58 = vadd.f32 %v990_v11, %v2968_v0  ;;  %v992_v59 = vpop.f32.mrb[27].mxu0  ;;  %v1114_v60 = vmul.f32 0.088388346, %v987_v53 }
 0x2b7   : > { %1210 = vxpose.xlu0.b32.cont [13/16] %v989_v57, 128  ;;  %v993_v61 = vadd.f32 %v992_v59, %v2970_v39 }
 0x2b8   : > { %v1115_v12 = vmul.f32 0.088388346, %v991_v58 }
 0x2ba   : > { %v1935_v62 = vpack.c.bf16 %v1115_v12, %v1114_v60 }
 0x2bb   : > { %1211 = vxpose.xlu0.b32.cont [14/16] %v993_v61, 128  ;;  %v996_v13 = vpop.f32.mrb[28].mxu0 }
 0x2bc   : > { %2034 = vst [vmem:[%s2983_s26 + $0x30] sm:$0xff] %v1935_v62   ;;  %v997_v22 = vadd.f32 %v996_v13, %v2968_v0  ;;  %v998_v32 = vpop.f32.mrb[29].mxu0 }
 0x2bd   : > { %v999_v15 = vadd.f32 %v998_v32, %v2970_v39  ;;  %v1000_v63 = vpop.f32.mrb[30].mxu0 }
 0x2be   : > { %v1001_v1 = vadd.f32 %v1000_v63, %v2968_v0  ;;  %v1002_v4 = vpop.f32.mrb[31].mxu0  ;;  %v1116_v5 = vmul.f32 0.088388346, %v997_v22 }
 0x2bf   : > { %1212 = vxpose.xlu0.b32.cont [15/16] %v999_v15, 128  ;;  %v1003_v46 = vadd.f32 %v1002_v4, %v2970_v39 }
 0x2c0   : > { %v1117_v6 = vmul.f32 0.088388346, %v1001_v1 }
 0x2c2   : > { %v1940_v7 = vpack.c.bf16 %v1117_v6, %v1116_v5 }
 0x2c3   : > { %1213 = vxpose.xlu0.b32.end [16/16] %v1003_v46, 128 }
 0x2c4   : > { %2035 = vst [vmem:[%s2983_s26 + $0x38] sm:$0xff] %v1940_v7   ;;  %s2535_s26 = smov [#allocation8]  }
 0x2c5   : > { %s2336_s0 = sshll.u32 %s2535_s26, 4  ;;  %s2337_s0 = int_to_ptr.vmem [resolvable:$false] %s2336_s0 }
 0x2c6   : > { %s2338_s22 = scalar_lea.vmem %s2337_s0, 2048  ;;  %p2339_p13 = scmp.lt.s32.totalorder %s3047_s21, %s2337_s0 }
 0x2c7   : > { %p2340_p3 = scmp.lt.s32.totalorder %s2338_s22, %s2332_s25 }
 0x2c9   : > { %p2341_p7 = por %p2340_p3, %p2339_p13 }
 0x2cb   : > { %p2342_p1 = pnand %p2341_p7, %p2335_p12 }
 0x2cd   : > { %2345 = shalt.err (!%p2342_p1)
}
 0x2ce   : > { %s2346_s13 = scalar_lea.hbm %s3058_s17, 1024  ;;  %s2350_s14 = scalar_lea.hbm %s3286_s15, 4096 }
 0x2cf   : > { %p2347_p2 = scmp.ne.s32.totalorder %s3058_s17, %s2346_s13  ;;  %p2351_p9 = scmp.lt.u32.totalorder %s3058_s17, %s3286_s15 }
 0x2d0   : > { %p2352_p0 = scmp.lt.u32.totalorder %s2350_s14, %s2346_s13  ;;  %p2354_p8 = scmp.lt.u32.totalorder %s2346_s13, %s3058_s17 }
 0x2d1   : > { %p2348_p4 = pnand %p2347_p2, %p2690_p11 }
 0x2d2   : > { %p2353_p6 = por %p2352_p0, %p2351_p9 }
 0x2d3   : > { %p2349_p5 = pneg %p2348_p4 }
 0x2d4   : > { %p2355_p10 = por %p2354_p8, %p2353_p6 }
 0x2d6   : > { %p2356_p12 = pnand %p2355_p10, %p2349_p5 }
 0x2d8   : > { %2359 = shalt.err (!%p2356_p12)
}
 0x2d9   : > { %s2536_s27 = smov 64   ;;  %s2537_s25 = smov 4  }
 0x2da   : > { %2105 = dma.vmem_to_hbm [thread:$0]  (%p2690_p11), %s3047_s21, 1024, %s3058_s17, %s3060_s5, %s2536_s27, %s2536_s27, %s2537_s25  }
 0x2db   : > { %s1474_s26 = sshll.u32 %s2989_s19, 4  ;;  %s3287_s24 = sld [smem:[#allocation26_spill]]  ;;  %s3095_s26 = int_to_ptr.vmem [resolvable:$true] %s1474_s26 }
 0x2dc   : > { %s1421_s14 = sshll.u32 %s2912_s3, 4  ;;  %s1391_s6 = scalar_lea.sflag [#allocation4], %s2755_s8  ;;  %s3097_s14 = int_to_ptr.vmem [resolvable:$true] %s1421_s14 }
 0x2dd   : > { %s2360_s0 = scalar_lea.vmem %s3097_s14, 1024  ;;  %s2538_s19 = smov [#allocation7]  }
 0x2de   : > { %p2361_p13 = scmp.ne.s32.totalorder %s3097_s14, %s2360_s0  ;;  %s2364_s21 = sshll.u32 %s2538_s19, 4  ;;  %s2365_s21 = int_to_ptr.vmem [resolvable:$false] %s2364_s21 }
 0x2df   : > { %s2366_s17 = scalar_lea.vmem %s2365_s21, 2048  ;;  %p2367_p1 = scmp.lt.s32.totalorder %s3097_s14, %s2365_s21 }
 0x2e0   : > { %p2362_p3 = pnand %p2361_p13, %p2690_p11  ;;  %p2368_p2 = scmp.lt.s32.totalorder %s2366_s17, %s2360_s0 }
 0x2e1   : > { %s3092_s16 = scalar_lea.hbm %s3287_s24, %s3052_s10 }
 0x2e2   : > { %p2363_p7 = pneg %p2362_p3  ;;  %p2369_p4 = por %p2368_p2, %p2367_p1 }
 0x2e4   : > { %p2370_p5 = pnand %p2369_p4, %p2363_p7 }
 0x2e6   : > { %2373 = shalt.err (!%p2370_p5)
}
 0x2e7   : > { %s2374_s3 = scalar_lea.hbm %s3092_s16, 1024  ;;  %s2378_s19 = scalar_lea.hbm %s3287_s24, 4096 }
 0x2e8   : > { %p2375_p9 = scmp.ne.s32.totalorder %s3092_s16, %s2374_s3  ;;  %p2379_p8 = scmp.lt.u32.totalorder %s3092_s16, %s3287_s24 }
 0x2e9   : > { %p2380_p10 = scmp.lt.u32.totalorder %s2378_s19, %s2374_s3  ;;  %p2382_p13 = scmp.lt.u32.totalorder %s2374_s3, %s3092_s16 }
 0x2ea   : > { %p2376_p0 = pnand %p2375_p9, %p2690_p11 }
 0x2eb   : > { %p2381_p12 = por %p2380_p10, %p2379_p8 }
 0x2ec   : > { %p2377_p6 = pneg %p2376_p0 }
 0x2ed   : > { %p2383_p3 = por %p2382_p13, %p2381_p12 }
 0x2ef   : > { %p2384_p7 = pnand %p2383_p3, %p2377_p6 }
 0x2f1   : > { %2387 = shalt.err (!%p2384_p7)
}
 0x2f2   : > { %2104 = dma.vmem_to_hbm [thread:$0]  (%p2690_p11), %s3097_s14, 1024, %s3092_s16, %s1391_s6, %s2536_s27, %s2536_s27, %s2537_s25  }
 0x2f3   : > { %s3288_s17 = sld [smem:[#allocation29_spill]]  ;;  %s1406_s22 = scalar_lea.sflag [#allocation12], %s2755_s8 }
 0x2f4   : > { %s2388_s13 = scalar_lea.vmem %s3095_s26, 1024  ;;  %s2539_s19 = smov [#allocation11]  }
 0x2f5   : > { %p2389_p1 = scmp.ne.s32.totalorder %s3095_s26, %s2388_s13  ;;  %s2392_s21 = sshll.u32 %s2539_s19, 4  ;;  %s2393_s21 = int_to_ptr.vmem [resolvable:$false] %s2392_s21 }
 0x2f6   : > { %s2394_s1 = scalar_lea.vmem %s2393_s21, 2048  ;;  %p2395_p5 = scmp.lt.s32.totalorder %s3095_s26, %s2393_s21 }
 0x2f7   : > { %p2390_p2 = pnand %p2389_p1, %p2690_p11  ;;  %p2396_p9 = scmp.lt.s32.totalorder %s2394_s1, %s2388_s13 }
 0x2f9   : > { %s3130_s3 = scalar_lea.hbm %s3288_s17, %s3052_s10  ;;  %p2391_p4 = pneg %p2390_p2 }
 0x2fa   : > { %p2397_p0 = por %p2396_p9, %p2395_p5 }
 0x2fc   : > { %p2398_p6 = pnand %p2397_p0, %p2391_p4 }
 0x2fe   : > { %2401 = shalt.err (!%p2398_p6)
}
 0x2ff   : > { %s2402_s10 = scalar_lea.hbm %s3130_s3, 1024  ;;  %s2406_s6 = scalar_lea.hbm %s3288_s17, 4096 }
 0x300   : > { %p2403_p8 = scmp.ne.s32.totalorder %s3130_s3, %s2402_s10  ;;  %p2407_p13 = scmp.lt.u32.totalorder %s3130_s3, %s3288_s17 }
 0x301   : > { %p2408_p3 = scmp.lt.u32.totalorder %s2406_s6, %s2402_s10  ;;  %p2410_p1 = scmp.lt.u32.totalorder %s2402_s10, %s3130_s3 }
 0x302   : > { %p2404_p10 = pnand %p2403_p8, %p2690_p11 }
 0x303   : > { %p2409_p7 = por %p2408_p3, %p2407_p13 }
 0x304   : > { %p2405_p12 = pneg %p2404_p10 }
 0x305   : > { %p2411_p2 = por %p2410_p1, %p2409_p7 }
 0x307   : > { %p2412_p4 = pnand %p2411_p2, %p2405_p12 }
 0x309   : > { %2415 = shalt.err (!%p2412_p4)
}
 0x30a   : > { %2107 = dma.vmem_to_hbm [thread:$0]  (%p2690_p11), %s3095_s26, 1024, %s3130_s3, %s1406_s22, %s2536_s27, %s2536_s27, %s2537_s25   ;;  %v1214_v0 = vpop.trf.xlu0 }
 0x30b   : > { %s3160_s1 = scalar_lea.vmem [#allocation10], %s2901_s18  ;;  %s3289_s8 = sshll.u32 %s2514_s9, 5 }
 0x30c   : > { %s1453_s18 = sadd.s32 %s2510_s30, %s3289_s8  ;;  %s1456_s26 = sshll.u32 %s3160_s1, 4  ;;  %s3173_s26 = int_to_ptr.vmem [resolvable:$true] %s1456_s26 }
 0x30d   : > { %s1792_s3 = sshll.u32 %s1453_s18, 6  ;;  %s3290_s19 = sld [smem:[#allocation28_spill]] }
 0x30e   : > { %v1215_v39 = vpop.trf.xlu0  ;;  %s2416_s10 = scalar_lea.vmem %s3173_s26, 1024  ;;  %s2540_s30 = smov [#allocation10]  }
 0x30f   : > { %v1945_v8 = vpack.c.bf16 %v1215_v39, %v1214_v0  ;;  %p2417_p5 = scmp.ne.s32.totalorder %s3173_s26, %s2416_s10  ;;  %s2420_s9 = sshll.u32 %s2540_s30, 4  ;;  %s2421_s9 = int_to_ptr.vmem [resolvable:$false] %s2420_s9 }
 0x310   : > { %s2422_s16 = scalar_lea.vmem %s2421_s9, 2048  ;;  %p2423_p6 = scmp.lt.s32.totalorder %s3173_s26, %s2421_s9 }
 0x311   : > { %1946 = vst [vmem:[%s3160_s1] sm:$0xff] %v1945_v8   ;;  %p2418_p9 = pnand %p2417_p5, %p2690_p11  ;;  %p2424_p8 = scmp.lt.s32.totalorder %s2422_s16, %s2416_s10 }
 0x312   : > { %v1216_v9 = vpop.trf.xlu0 }
 0x313   : > { %s3178_s21 = scalar_lea.hbm %s3290_s19, %s1792_s3  ;;  %p2419_p0 = pneg %p2418_p9 }
 0x314   : > { %p2425_p10 = por %p2424_p8, %p2423_p6 }
 0x316   : > { %v1217_v17 = vpop.trf.xlu0  ;;  %p2426_p12 = pnand %p2425_p10, %p2419_p0 }
 0x317   : > { %v1950_v40 = vpack.c.bf16 %v1217_v17, %v1216_v9 }
 0x319   : > { %2036 = vst [vmem:[%s3160_s1 + $0x8] sm:$0xff] %v1950_v40  }
 0x31a   : > { %v1218_v18 = vpop.trf.xlu0 }
 0x31e   : > { %v1219_v19 = vpop.trf.xlu0 }
 0x31f   : > { %v1955_v20 = vpack.c.bf16 %v1219_v19, %v1218_v18 }
 0x321   : > { %2037 = vst [vmem:[%s3160_s1 + $0x10] sm:$0xff] %v1955_v20  }
 0x322   : > { %v1220_v47 = vpop.trf.xlu0 }
 0x326   : > { %v1221_v21 = vpop.trf.xlu0 }
 0x327   : > { %v1960_v23 = vpack.c.bf16 %v1221_v21, %v1220_v47 }
 0x329   : > { %2038 = vst [vmem:[%s3160_s1 + $0x18] sm:$0xff] %v1960_v23  }
 0x32a   : > { %v1222_v26 = vpop.trf.xlu0 }
 0x32e   : > { %v1223_v27 = vpop.trf.xlu0 }
 0x32f   : > { %v1965_v28 = vpack.c.bf16 %v1223_v27, %v1222_v26 }
 0x331   : > { %2039 = vst [vmem:[%s3160_s1 + $0x20] sm:$0xff] %v1965_v28  }
 0x332   : > { %v1224_v29 = vpop.trf.xlu0 }
 0x336   : > { %v1225_v30 = vpop.trf.xlu0 }
 0x337   : > { %v1970_v33 = vpack.c.bf16 %v1225_v30, %v1224_v29 }
 0x339   : > { %2040 = vst [vmem:[%s3160_s1 + $0x28] sm:$0xff] %v1970_v33  }
 0x33a   : > { %v1226_v24 = vpop.trf.xlu0 }
 0x33e   : > { %v1227_v48 = vpop.trf.xlu0 }
 0x33f   : > { %v1975_v34 = vpack.c.bf16 %v1227_v48, %v1226_v24 }
 0x341   : > { %2041 = vst [vmem:[%s3160_s1 + $0x30] sm:$0xff] %v1975_v34  }
 0x342   : > { %v1228_v55 = vpop.trf.xlu0 }
 0x346   : > { %v1229_v14 = vpop.trf.xlu0 }
 0x347   : > { %v1980_v35 = vpack.c.bf16 %v1229_v14, %v1228_v55 }
 0x349   : > { %2042 = vst [vmem:[%s3160_s1 + $0x38] sm:$0xff] %v1980_v35  }
 0x34a   : > { %2429 = shalt.err (!%p2426_p12)
}
 0x34b   : > { %s2430_s14 = scalar_lea.hbm %s3178_s21, 1024  ;;  %s2434_s0 = scalar_lea.hbm %s3290_s19, 4096 }
 0x34c   : > { %p2431_p13 = scmp.ne.s32.totalorder %s3178_s21, %s2430_s14  ;;  %p2435_p1 = scmp.lt.u32.totalorder %s3178_s21, %s3290_s19 }
 0x34d   : > { %p2436_p2 = scmp.lt.u32.totalorder %s2434_s0, %s2430_s14  ;;  %p2438_p5 = scmp.lt.u32.totalorder %s2430_s14, %s3178_s21 }
 0x34e   : > { %p2432_p3 = pnand %p2431_p13, %p2690_p11 }
 0x34f   : > { %p2437_p4 = por %p2436_p2, %p2435_p1 }
 0x350   : > { %p2433_p7 = pneg %p2432_p3 }
 0x351   : > { %p2439_p9 = por %p2438_p5, %p2437_p4 }
 0x353   : > { %p2440_p0 = pnand %p2439_p9, %p2433_p7 }
 0x355   : > { %2443 = shalt.err (!%p2440_p0)
}
 0x356   : > { %s2541_s18 = smov 128  }
 0x357   : > { %2106 = dma.vmem_to_hbm [thread:$0]  (%p2690_p11), %s3173_s26, 1024, %s3178_s21, %s3060_s5, %s2536_s27, %s2541_s18, %s2537_s25  }
 0x358 PF: > { %s3291_s3 = sld [smem:[#allocation18_spill]]  ;;  %s3292_s22 = sld [smem:[#allocation20_spill]] }
 0x359   : > { %p2136_p6 = scmp.ge.s32.totalorder %s2526_s12, 2 }
 0x35e   : > { %s1489_s13 = sand.u32 1, %s3291_s3   ;;  %p3293_p8 = scmp.ne.s32.totalorder %s3292_s22, 0 }
 0x35f   : > { %s1490_s10 = scalar_lea.sflag [#allocation4], %s1489_s13 }
 0x360   : > { %p2121_p10 = pnand %p2136_p6, %p3293_p8 }
 0x362   : > { %2485 = dma.done.wait (!%p2121_p10), %s1490_s10, 1024  }
 0x363   : > { %2487 = vsyncadd (!%p2121_p10), %s1490_s10, 4294966272  ;;  %s3294_s30 = sadd.s32 4294967294, %s2526_s12  }
 0x364   : > { %s1498_s20 = sand.u32 1, %s3294_s30  }
 0x365   : > { %s1499_s9 = scalar_lea.sflag [#allocation9], %s1498_s20 }
 0x366   : > { %2489 = dma.done.wait (!%p2121_p10), %s1499_s9, 2048  }
 0x367   : > { %2491 = vsyncadd (!%p2121_p10), %s1499_s9, 4294965248  ;;  %s1517_s16 = scalar_lea.sflag [#allocation12], %s1489_s13 }
 0x368   : > { %2493 = dma.done.wait (!%p2121_p10), %s1517_s16, 1024  }
 0x369   : > { %2495 = vsyncadd (!%p2121_p10), %s1517_s16, 4294966272  ;;  %s32_s12 = sadd.s32 1, %s2526_s12   ;;  %s3295_s30 = sld [smem:[#allocation19_spill]] }
 0x36a   : > { %p29_p11 = scmp.ge.s32.totalorder %s32_s12, 6   ;;  %s3296_s10 = sld [smem:[#allocation21_spill]] }
 0x36b   : > { %s3297_s5 = sld [smem:[#allocation22_spill]]  ;;  %s3298_s27 = smov %s2502_s28 }
 0x36c   : > { %s3299_s28 = smov %s2506_s29  ;;  %s3300_s29 = smov %s2707_s7 }
 0x36d   : > { %s3301_s9 = smov %s2522_s11  ;;  %31 = sbr.rel (!%p29_p11) target bundleno = 20 (0x14), region = 138 }
 0x371   : > { %s3302_s11 = smov %s3297_s5 }
 0x374   :  { %1522 = vsyncpa [#allocation3], 1 }
 0x375   :  { %1524 = vsyncpa [#allocation3 + $0x1], 1 }
 0x376   :  { %1525 = vsyncpa [#allocation6], 1 }
 0x377   :  { %1526 = vsyncpa [#allocation4], 1 }
 0x378   :  { %1528 = vsyncpa [#allocation4 + $0x1], 1 }
 0x379   :  { %1529 = vsyncpa [#allocation9], 1 }
 0x37a   :  { %1531 = vsyncpa [#allocation9 + $0x1], 1 }
 0x37b   :  { %1532 = vsyncpa [#allocation12], 1 }
 0x37c   :  { %1534 = vsyncpa [#allocation12 + $0x1], 1 }

// kernel: tpu_custom_call.1
= control target key start
LH: loop header
LB: loop body
LE: loop exit
PB: predicated region body
PF: predicated region fallthrough
CT: control target
= control target key end

     0   :  { %s3235_s0 = inlined_call_operand.hbm [shape: f32[2,256,128], index: 0, kind: input, shape index: {}]   ;;  %s3236_s1 = inlined_call_operand.vmem [shape: f32[1,128], index: 1, kind: input, shape index: {}]   ;;  %s3237_s2 = inlined_call_operand.vmem [shape: f32[1,128], index: 2, kind: input, shape index: {}]   ;;  %s3238_s3 = inlined_call_operand.hbm [shape: bf16[128,384], index: 3, kind: input, shape index: {}]   ;;  %s3239_s4 = inlined_call_operand.vmem [shape: f32[1,384], index: 4, kind: input, shape index: {}]   ;;  %s3240_s5 = inlined_call_operand.hbm [shape: bf16[2,256,128], index: 5, kind: output, shape index: {0}]   ;;  %s3241_s6 = inlined_call_operand.hbm [shape: bf16[2,256,128], index: 6, kind: output, shape index: {1}]   ;;  %s3242_s7 = inlined_call_operand.hbm [shape: bf16[2,128,256], index: 7, kind: output, shape index: {2}]   ;;  %s3243_s8 = inlined_call_operand.hbm [shape: bf16[2,256,128], index: 8, kind: output, shape index: {3}]  }
   0x1   :  { %3258 = sst [smem:[#allocation23_spill]] %s3235_s0 }
   0x2   :  { %3259 = sst [smem:[#allocation24_spill]] %s3236_s1 }
   0x3   :  { %3260 = sst [smem:[#allocation25_spill]] %s3238_s3 }
   0x4   :  { %3261 = sst [smem:[#allocation26_spill]] %s3240_s5 }
   0x5   :  { %3262 = sst [smem:[#allocation27_spill]] %s3241_s6 }
   0x6   :  { %3263 = sst [smem:[#allocation28_spill]] %s3242_s7 }
   0x7   :  { %3264 = sst [smem:[#allocation29_spill]] %s3243_s8 }
   0x8   :  { %14 = vsyncpa [#allocation3], 0 }
   0x9   :  { %16 = vsyncpa [#allocation3 + $0x1], 0 }
   0xa   :  { %17 = vsyncpa [#allocation6], 0 }
   0xb   :  { %18 = vsyncpa [#allocation4], 0 }
   0xc   :  { %20 = vsyncpa [#allocation4 + $0x1], 0 }
   0xd   :  { %21 = vsyncpa [#allocation9], 0 }
   0xe   :  { %23 = vsyncpa [#allocation9 + $0x1], 0 }
   0xf   :  { %24 = vsyncpa [#allocation12], 0 }
  0x10   :  { %26 = vsyncpa [#allocation12 + $0x1], 0  ;;  %s2587_s27 = smov 0   ;;  %s2589_s28 = smov 0  }
  0x11   :  { %s2591_s29 = smov 0   ;;  %s2593_s30 = smov 0  }
  0x12   :  { %s2595_s9 = smov 0   ;;  %s2597_s10 = smov 0  }
  0x13   :  { %s2599_s11 = smov 0   ;;  %s2601_s12 = smov 0  }
  0x14 LB: > { %3265 = sst [smem:[#allocation18_spill]] %s2498_s27  ;;  %s2628_s13 = sadd.s32 4294967295, %s2526_s12   ;;  %s2526_s12 = sphi %s2601_s12, %s32_s12   ;;  %s2522_s11 = sphi %s2599_s11, %s3302_s11   ;;  %s2518_s10 = sphi %s2597_s10, %s3296_s10   ;;  %s2514_s9 = sphi %s2595_s9, %s3301_s9   ;;  %s2510_s30 = sphi %s2593_s30, %s3295_s30   ;;  %s2506_s29 = sphi %s2591_s29, %s3300_s29   ;;  %s2502_s28 = sphi %s2589_s28, %s3299_s28   ;;  %s2498_s27 = sphi %s2587_s27, %s3298_s27  }
  0x15   : > { %3266 = sst [smem:[#allocation19_spill]] %s2518_s10  ;;  %s3244_s14 = sadd.s32 4294967294, %s2526_s12  }
  0x16   : > { %p66_p0 = scmp.ne.s32.totalorder %s2502_s28, %s2498_s27  ;;  %p3245_p1 = scmp.eq.s32.totalorder %s2628_s13, 0 }
  0x17   : > { %p182_p3 = scmp.eq.s32.totalorder %s3244_s14, 3  ;;  %p1677_p5 = scmp.ge.s32.totalorder %s2526_s12, 1 }
  0x18   : > { %p2639_p4 = por %p3245_p1, %p66_p0  ;;  %p273_p7 = scmp.lt.s32.totalorder %s2526_s12, 5 }
  0x19   : > { %p2644_p6 = por %p182_p3, %p66_p0  ;;  %s2528_s18 = smov [#allocation5]  }
  0x1a   : > { %s3267_s15 = scalar_select %p2639_p4, 1, 0 }
  0x1b   : > { %s3268_s16 = scalar_select %p2644_p6, 1, 0 }
  0x1c   : > { %p2649_p8 = pnand %p1677_p5, %p273_p7  ;;  %s291_s19 = sshll.u32 %s2528_s18, 4  ;;  %s292_s19 = int_to_ptr.vmem [resolvable:$true] %s291_s19 }
  0x1d   : > { %3269 = sst [smem:[#allocation20_spill]] %s3268_s16  ;;  %s3272_s3 = sld [smem:[#allocation25_spill]] }
  0x1e   : > { %s3270_s17 = scalar_select %p2649_p8, 1, 0 }
  0x1f   : > { %p2112_p9 = pneg %p2649_p8 }
  0x21   : > { %p2657_p10 = pnand %p2112_p9, %p3245_p1 }
  0x23   : > { %s2274_s23 = scalar_lea.hbm %s3272_s3, 3072  ;;  %p2276_p12 = pneg %p2657_p10 }
  0x24   : > { %p2275_p11 = scmp.ne.s32.totalorder %s3272_s3, %s2274_s23  ;;  %p2281_p3 = scmp.lt.u32.totalorder %s2274_s23, %s3272_s3 }
  0x26   : > { %p2277_p13 = pnand %p2276_p12, %p2275_p11 }
  0x28   : > { %p2278_p0 = pneg %p2277_p13 }
  0x2a   : > { %p2283_p5 = pnand %p2281_p3, %p2278_p0 }
  0x2c   : > { %2286 = shalt.err (!%p2283_p5)
}
  0x2d   : > { %s2287_s14 = scalar_lea.vmem %s292_s19, 3072  ;;  %p2295_p2 = scmp.lt.s32.totalorder %s292_s19, %s292_s19 }
  0x2e   : > { %p2288_p7 = scmp.ne.s32.totalorder %s292_s19, %s2287_s14  ;;  %p2296_p6 = scmp.lt.s32.totalorder %s2287_s14, %s2287_s14 }
  0x30   : > { %p2290_p9 = pnand %p2288_p7, %p2276_p12  ;;  %p2297_p4 = por %p2296_p6, %p2295_p2 }
  0x32   : > { %p2291_p1 = pneg %p2290_p9 }
  0x34   : > { %p2298_p8 = pnand %p2297_p4, %p2291_p1 }
  0x36   : > { %2301 = shalt.err (!%p2298_p8)
}
  0x37   : > { %s2529_s21 = smov 192   ;;  %s2530_s22 = smov 12  }
  0x38   : > { %2115 = dma.hbm_to_vmem [thread:$0]  (!%p2657_p10), %s3272_s3, 3072, %s292_s19, [#allocation6], %s2529_s21, %s2529_s21, %s2530_s22  }
  0x39   : > { %s41_s14 = sadd.s32 1, %s2518_s10  ;;  %s44_s25 = sadd.s32 1, %s2522_s11 }
  0x3a   : > { %p42_p1 = scmp.ge.s32.totalorder %s41_s14, 2  ;;  %s53_s26 = sadd.s32 1, %s2506_s29 }
  0x3b   : > { %p60_p2 = scmp.ne.s32.totalorder %s2506_s29, %s2502_s28  ;;  %p61_p4 = scmp.eq.s32.totalorder %s2526_s12, 0 }
  0x3c   : > { %s3304_s14 = smov (%p42_p1, %s41_s14), 0  ;;  %s3306_s25 = smov (!%p42_p1, %s44_s25), %s2522_s11 }
  0x3d   : > { %3273 = sst [smem:[#allocation21_spill]] %s3304_s14  ;;  %s49_s18 = ssub.s32 %s2518_s10, %s3304_s14 }
  0x3e   : > { %p46_p6 = scmp.ge.s32.totalorder %s3306_s25, 2  ;;  %p3274_p8 = scmp.eq.s32.totalorder %s2628_s13, 3 }
  0x3f   : > { %p2694_p10 = por %p61_p4, %p60_p2  ;;  %p2134_p12 = scmp.lt.s32.totalorder %s2526_s12, 4 }
  0x40   : > { %p2690_p11 = por %p3274_p8, %p60_p2  ;;  %s3308_s25 = smov (%p46_p6, %s3306_s25), 0 }
  0x41   : > { %3277 = sst [smem:[#allocation22_spill]] %s3308_s25  ;;  %s308_s21 = sand.u32 1, %s2506_s29  }
  0x42   : > { %s1681_s22 = sshll.u32 %s2518_s10, 4  ;;  %s48_s23 = ssub.s32 %s2522_s11, %s3308_s25 }
  0x43   : > { %s50_s24 = sor.u32 %s49_s18, %s48_s23  ;;  %s1680_s3 = sshll.u32 %s308_s21, 7 }
  0x44   : > { %p51_p13 = scmp.eq.s32.totalorder %s50_s24, 0  ;;  %s1682_s14 = sshll.u32 %s2522_s11, 5 }
  0x45   : > { %s312_s16 = scalar_lea.vmem [#allocation2], %s1680_s3  ;;  %s318_s8 = sadd.s32 %s1682_s14, %s1681_s22 }
  0x46   : > { %s321_s27 = sshll.u32 %s312_s16, 4  ;;  %s1683_s5 = sshll.u32 %s318_s8, 7  ;;  %s2709_s27 = int_to_ptr.vmem [resolvable:$true] %s321_s27 }
  0x47   : > { %s2707_s7 = scalar_select %p51_p13, %s2506_s29, %s53_s26  }
  0x48   : > { %p2715_p0 = pnand %p2134_p12, %p2694_p10  ;;  %s3279_s0 = sld [smem:[#allocation23_spill]] }
  0x49   : > { %s2724_s3 = scalar_lea.sflag [#allocation3], %s308_s21 }
  0x4a   : > { %p2304_p5 = pneg %p2715_p0 }
  0x4e   : > { %s2722_s18 = scalar_lea.hbm %s3279_s0, %s1683_s5  ;;  %s2307_s14 = scalar_lea.hbm %s3279_s0, 8192 }
  0x4f   : > { %s2302_s8 = scalar_lea.hbm %s2722_s18, 2048  ;;  %p2308_p1 = scmp.lt.u32.totalorder %s2722_s18, %s3279_s0 }
  0x50   : > { %p2303_p3 = scmp.ne.s32.totalorder %s2722_s18, %s2302_s8  ;;  %p2309_p2 = scmp.lt.u32.totalorder %s2307_s14, %s2302_s8 }
  0x51   : > { %p2311_p6 = scmp.lt.u32.totalorder %s2302_s8, %s2722_s18 }
  0x52   : > { %p2305_p7 = pnand %p2304_p5, %p2303_p3  ;;  %p2310_p4 = por %p2309_p2, %p2308_p1 }
  0x54   : > { %p2306_p9 = pneg %p2305_p7  ;;  %p2312_p8 = por %p2311_p6, %p2310_p4 }
  0x56   : > { %p2313_p10 = pnand %p2312_p8, %p2306_p9 }
  0x58   : > { %2316 = shalt.err (!%p2313_p10)
}
  0x59   : > { %s2317_s26 = scalar_lea.vmem %s2709_s27, 2048  ;;  %s2531_s19 = smov [#allocation2]  }
  0x5a   : > { %p2318_p12 = scmp.ne.s32.totalorder %s2709_s27, %s2317_s26  ;;  %s2322_s21 = sshll.u32 %s2531_s19, 4  ;;  %s2323_s21 = int_to_ptr.vmem [resolvable:$false] %s2322_s21 }
  0x5b   : > { %s2324_s22 = scalar_lea.vmem %s2323_s21, 4096  ;;  %p2325_p7 = scmp.lt.s32.totalorder %s2709_s27, %s2323_s21 }
  0x5c   : > { %p2320_p13 = pnand %p2318_p12, %p2304_p5  ;;  %p2326_p1 = scmp.lt.s32.totalorder %s2324_s22, %s2317_s26 }
  0x5e   : > { %p2321_p3 = pneg %p2320_p13  ;;  %p2327_p2 = por %p2326_p1, %p2325_p7 }
  0x60   : > { %p2328_p4 = pnand %p2327_p2, %p2321_p3 }
  0x62   : > { %2331 = shalt.err (!%p2328_p4)
}
  0x63   : > { %s2532_s23 = smov 128   ;;  %s2533_s24 = smov 8  }
  0x64   : > { %2119 = dma.hbm_to_vmem [thread:$0]  (!%p2715_p0), %s2722_s18, 2048, %s2709_s27, %s2724_s3, %s2532_s23, %s2532_s23, %s2533_s24  }
  0x65   : > { %p3280_p5 = scmp.ne.s32.totalorder %s3270_s17, 0 }
  0x66   : > { %s2755_s8 = sand.u32 (!%p3280_p5), 1, %s2502_s28   ;;  %p3281_p9 = scmp.ne.s32.totalorder (!%p3280_p5), %s3267_s15, 0 }
  0x67   : > { %333 = sbr.rel (%p3280_p5) target bundleno = 856 (0x358), region = 40  ;;  %s1685_s16 = sshll.u32 (!%p3280_p5), %s2755_s8, 7 }
  0x68   : > { %s336_s10 = scalar_lea.sflag (!%p3280_p5), [#allocation3], %s2755_s8  ;;  %s2759_s14 = scalar_lea.vmem (!%p3280_p5), [#allocation2], %s1685_s16 }
  0x6e   : > { %2477 = dma.done.wait (%p3281_p9), %s336_s10, 2048  }
  0x6f   : > { %2479 = vsyncadd (%p3281_p9), %s336_s10, 4294965248  ;;  %p3282_p0 = scmp.eq.s32.totalorder %s2628_s13, 0 }
  0x71   : > { %2481 = dma.done.wait (%p3282_p0), [#allocation6], 3072   ;;  %p3283_p6 = pmov %p3282_p0 }
  0x72   : > { %v396_v0 = vld [vmem:[%s2759_s14] sm:$0xff]  ;;  %v398_v1 = vld [vmem:[%s2759_s14 + $0x10] sm:$0xff]  ;;  %v397_v2 = vld [vmem:[%s2759_s14 + $0x8] sm:$0xff]  ;;  %s3284_s1 = sld [smem:[#allocation24_spill]]  ;;  %s2901_s18 = sshll.u32 %s2755_s8, 6 }
  0x73   : > { %2483 = vsyncadd (%p3283_p6), [#allocation6], 4294964224  ;;  %412 = vadd.xlane.f32.xlu0 %v396_v0  ;;  %416 = vadd.xlane.f32.xlu1 %v398_v1  ;;  %v399_v3 = vld [vmem:[%s2759_s14 + $0x18] sm:$0xff]  ;;  %v400_v4 = vld [vmem:[%s2759_s14 + $0x20] sm:$0xff]  ;;  %s2912_s3 = scalar_lea.vmem [#allocation7], %s2901_s18  ;;  %s2983_s26 = scalar_lea.vmem [#allocation8], %s2901_s18 }
  0x74   : > { %v401_v5 = vld [vmem:[%s2759_s14 + $0x28] sm:$0xff]  ;;  %v402_v6 = vld [vmem:[%s2759_s14 + $0x30] sm:$0xff]  ;;  %v2777_v7 = vld [vmem:[%s2759_s14 + $0x38] sm:$0xff]  ;;  %s2989_s19 = scalar_lea.vmem [#allocation11], %s2901_s18  ;;  %s1439_s21 = sshll.u32 %s2983_s26, 4  ;;  %s3047_s21 = int_to_ptr.vmem [resolvable:$true] %s1439_s21 }
  0x75   : > { %v2780_v8 = vld [vmem:[%s2759_s14 + $0x40] sm:$0xff]  ;;  %v2783_v9 = vld [vmem:[%s2759_s14 + $0x48] sm:$0xff]  ;;  %v2789_v10 = vld [vmem:[%s2759_s14 + $0x50] sm:$0xff]  ;;  %s1785_s22 = sshll.u32 %s2510_s30, 4  ;;  %s3257_s23 = sshll.u32 %s2514_s9, 5 }
  0x76   : > { %v2792_v11 = vld [vmem:[%s2759_s14 + $0x58] sm:$0xff]  ;;  %v2797_v12 = vld [vmem:[%s2759_s14 + $0x60] sm:$0xff]  ;;  %v2800_v13 = vld [vmem:[%s2759_s14 + $0x68] sm:$0xff]  ;;  %s1418_s24 = sadd.s32 %s3257_s23, %s1785_s22  ;;  %s1395_s16 = sand.u32 1, %s2628_s13  }
  0x77   : > { %414 = vadd.xlane.f32.xlu0 %v397_v2  ;;  %418 = vadd.xlane.f32.xlu1 %v399_v3  ;;  %v2805_v14 = vld [vmem:[%s2759_s14 + $0x70] sm:$0xff]  ;;  %v2808_v15 = vld [vmem:[%s2759_s14 + $0x78] sm:$0xff]  ;;  %v2212_v17 = vld [vmem:[#allocation5] ss:$12 sps:$4 sm:$0xff]   ;;  %s3052_s10 = sshll.u32 %s1418_s24, 6  ;;  %s3285_s27 = sld [smem:[#allocation27_spill]] }
  0x78   : > { %v2210_v16 = vld [vmem:[#allocation5 + $0x4] ss:$12 sps:$4 sm:$0xff]   ;;  %v2213_v18 = vld [vmem:[#allocation5 + $0x1c] ss:$12 sps:$4 sm:$0xff]   ;;  %s3060_s5 = scalar_lea.sflag [#allocation9], %s1395_s16  ;;  %s2332_s25 = scalar_lea.vmem %s3047_s21, 1024 }
  0x79   : > { %v2215_v19 = vld [vmem:[#allocation5 + $0x8] ss:$12 sps:$4 sm:$0xff]   ;;  %892 = vmatprep.subr.bf16.mxu0 %v2210_v16  ;;  %v2216_v58 = vld [vmem:[#allocation5 + $0x18] ss:$12 sps:$4 sm:$0xff]   ;;  %p2333_p8 = scmp.ne.s32.totalorder %s3047_s21, %s2332_s25 }
  0x7a   : > { %893 = vmatpush1.bf16.msra.mxu0 %v2212_v17  ;;  %2066 = vmatprep.subr.bf16.mxu1 %v2215_v19 }
  0x7b   : > { %420 = vadd.xlane.f32.xlu0 %v400_v4  ;;  %422 = vadd.xlane.f32.xlu1 %v401_v5  ;;  %p2334_p10 = pnand %p2333_p8, %p2690_p11 }
  0x7c   : > { %894 = vmatprep.subr.bf16.mxu0 %v2213_v18  ;;  %2067 = vmatpush3.bf16.msra.mxu1 %v2215_v19  ;;  %v2221_v18 = vld [vmem:[#allocation5 + $0x4c] ss:$12 sps:$4 sm:$0xff]  }
  0x7d   : > { %v2223_v19 = vld [vmem:[#allocation5 + $0x38] ss:$12 sps:$4 sm:$0xff]   ;;  %s3286_s15 = smov %s3285_s27  ;;  %s3058_s17 = scalar_lea.hbm %s3285_s27, %s3052_s10 }
  0x7e   : > { %895 = vmatpush1.bf16.msra.mxu0 %v2216_v58  ;;  %p2335_p12 = pneg %p2334_p10 }
  0x7f   : > { %424 = vadd.xlane.f32.xlu0 %v402_v6  ;;  %426 = vadd.xlane.f32.xlu1 %v2777_v7 }
  0x83   : > { %428 = vadd.xlane.f32.xlu0 %v2780_v8  ;;  %430 = vadd.xlane.f32.xlu1 %v2783_v9 }
  0x87   : > { %432 = vadd.xlane.f32.xlu0 %v2789_v10  ;;  %434 = vadd.xlane.f32.xlu1 %v2792_v11 }
  0x8b   : > { %436 = vadd.xlane.f32.xlu0 %v2797_v12  ;;  %438 = vadd.xlane.f32.xlu1 %v2800_v13 }
  0x8f   : > { %440 = vadd.xlane.f32.xlu0 %v2805_v14  ;;  %442 = vadd.xlane.f32.xlu1 %v2808_v15 }
 0x100   : > { %v413_v20 = vpop.xlane.xlu0 %412  ;;  %v417_v21 = vpop.xlane.xlu1 %416 }
 0x101   : > { %v445_v22 = vmul.f32 0.0078125, %v413_v20  ;;  %v447_v23 = vmul.f32 0.0078125, %v417_v21 }
 0x103   : > { %v2812_v24 = vsub.f32 %v396_v0, %v445_v22  ;;  %v2814_v25 = vsub.f32 %v398_v1, %v447_v23  ;;  %v2217_v0 = vld [vmem:[#allocation5 + $0x34] ss:$12 sps:$4 sm:$0xff]  }
 0x104   : > { %v415_v26 = vpop.xlane.xlu0 %414  ;;  %v419_v27 = vpop.xlane.xlu1 %418  ;;  %v2219_v1 = vld [vmem:[#allocation5 + $0x20] ss:$12 sps:$4 sm:$0xff]   ;;  %896 = vmatprep.subr.bf16.mxu0 %v2217_v0  ;;  %v2224_v22 = vld [vmem:[#allocation5 + $0x48] ss:$12 sps:$4 sm:$0xff]  }
 0x105   : > { %v446_v28 = vmul.f32 0.0078125, %v415_v26  ;;  %v477_v29 = vmul.f32 %v2812_v24, %v2812_v24  ;;  %v448_v30 = vmul.f32 0.0078125, %v419_v27  ;;  %v479_v33 = vmul.f32 %v2814_v25, %v2814_v25  ;;  %2068 = vmatprep.subr.bf16.mxu1 %v2219_v1 }
 0x106   : > { %2069 = vmatpush3.bf16.msra.mxu1 %v2219_v1 }
 0x107   : > { %v2818_v31 = vsub.f32 %v397_v2, %v446_v28  ;;  %493 = vadd.xlane.f32.xlu0 %v477_v29  ;;  %v2820_v32 = vsub.f32 %v399_v3, %v448_v30  ;;  %2070 = vmatprep.subr.bf16.mxu1 %v2223_v19  ;;  %v2225_v29 = vld [vmem:[#allocation5 + $0x64] ss:$12 sps:$4 sm:$0xff]  }
 0x108   : > { %v421_v34 = vpop.xlane.xlu0 %420  ;;  %v423_v35 = vpop.xlane.xlu1 %422  ;;  %v2227_v30 = vld [vmem:[#allocation5 + $0x50] ss:$12 sps:$4 sm:$0xff]  }
 0x109   : > { %v449_v36 = vmul.f32 0.0078125, %v421_v34  ;;  %v478_v37 = vmul.f32 %v2818_v31, %v2818_v31  ;;  %v450_v38 = vmul.f32 0.0078125, %v423_v35  ;;  %v480_v41 = vmul.f32 %v2820_v32, %v2820_v32  ;;  %v2231_v35 = vld [vmem:[#allocation5 + $0x68] ss:$12 sps:$4 sm:$0xff]  }
 0x10a   : > { %2071 = vmatpush3.bf16.msra.mxu1 %v2223_v19 }
 0x10b   : > { %v2826_v39 = vsub.f32 %v400_v4, %v449_v36  ;;  %497 = vadd.xlane.f32.xlu0 %v479_v33  ;;  %495 = vadd.xlane.f32.xlu1 %v478_v37  ;;  %v2828_v40 = vsub.f32 %v401_v5, %v450_v38  ;;  %v2228_v33 = vld [vmem:[#allocation5 + $0x60] ss:$12 sps:$4 sm:$0xff]   ;;  %v2232_v36 = vld [vmem:[#allocation5 + $0x78] ss:$12 sps:$4 sm:$0xff]  }
 0x10c   : > { %v425_v42 = vpop.xlane.xlu0 %424  ;;  %v427_v43 = vpop.xlane.xlu1 %426  ;;  %2072 = vmatprep.subr.bf16.mxu1 %v2227_v30  ;;  %v2233_v37 = vld [vmem:[#allocation5 + $0x94] ss:$12 sps:$4 sm:$0xff]  }
 0x10d   : > { %v451_v44 = vmul.f32 0.0078125, %v425_v42  ;;  %v481_v45 = vmul.f32 %v2826_v39, %v2826_v39  ;;  %v452_v46 = vmul.f32 0.0078125, %v427_v43  ;;  %v482_v49 = vmul.f32 %v2828_v40, %v2828_v40  ;;  %v2235_v38 = vld [vmem:[#allocation5 + $0x80] ss:$12 sps:$4 sm:$0xff]   ;;  %v2239_v43 = vld [vmem:[#allocation5 + $0x98] ss:$12 sps:$4 sm:$0xff]  }
 0x10e   : > { %2073 = vmatpush3.bf16.msra.mxu1 %v2227_v30  ;;  %v2237_v42 = vld [vmem:[#allocation5 + $0xac] ss:$12 sps:$4 sm:$0xff]  }
 0x10f   : > { %v2834_v47 = vsub.f32 %v402_v6, %v451_v44  ;;  %499 = vadd.xlane.f32.xlu1 %v480_v41  ;;  %501 = vadd.xlane.f32.xlu0 %v481_v45  ;;  %v2837_v48 = vsub.f32 %v2777_v7, %v452_v46  ;;  %v2220_v7 = vld [vmem:[#allocation5 + $0x30] ss:$12 sps:$4 sm:$0xff]   ;;  %v2240_v44 = vld [vmem:[#allocation5 + $0xa8] ss:$12 sps:$4 sm:$0xff]   ;;  %v2534_v46 = vmov 0  }
 0x110   : > { %v429_v50 = vpop.xlane.xlu0 %428  ;;  %v431_v51 = vpop.xlane.xlu1 %430  ;;  %897 = vmatpush1.bf16.msra.mxu0 %v2220_v7  ;;  %2074 = vmatprep.subr.bf16.mxu1 %v2231_v35  ;;  %v2236_v41 = vld [vmem:[#allocation5 + $0x90] ss:$12 sps:$4 sm:$0xff]  }
 0x111   : > { %v453_v52 = vmul.f32 0.0078125, %v429_v50  ;;  %v483_v53 = vmul.f32 %v2834_v47, %v2834_v47  ;;  %v454_v54 = vmul.f32 0.0078125, %v431_v51  ;;  %v484_v57 = vmul.f32 %v2837_v48, %v2837_v48  ;;  %898 = vmatprep.subr.bf16.mxu0 %v2221_v18  ;;  %v2241_v45 = vld [vmem:[#allocation5 + $0xb0] ss:$12 sps:$4 sm:$0xff]   ;;  %924 = vmatprep.mubr.bf16.mxu0 %v2534_v46 }
 0x112   : > { %2075 = vmatpush3.bf16.msra.mxu1 %v2231_v35 }
 0x113   : > { %v2844_v55 = vsub.f32 %v2780_v8, %v453_v52  ;;  %503 = vadd.xlane.f32.xlu1 %v482_v49  ;;  %505 = vadd.xlane.f32.xlu0 %v483_v53  ;;  %v2847_v56 = vsub.f32 %v2783_v9, %v454_v54 }
 0x114   : > { %v433_v59 = vpop.xlane.xlu0 %432  ;;  %v435_v60 = vpop.xlane.xlu1 %434  ;;  %899 = vmatpush1.bf16.msra.mxu0 %v2224_v22  ;;  %2076 = vmatprep.subr.bf16.mxu1 %v2235_v38  ;;  %v2890_v22 = vld [vmem:[%s3284_s1] ss:$0 sm:$0xff] }
 0x115   : > { %v455_v61 = vmul.f32 0.0078125, %v433_v59  ;;  %v485_v62 = vmul.f32 %v2844_v55, %v2844_v55  ;;  %v456_v63 = vmul.f32 0.0078125, %v435_v60  ;;  %v486_v4 = vmul.f32 %v2847_v56, %v2847_v56  ;;  %900 = vmatprep.subr.bf16.mxu0 %v2225_v29 }
 0x116   : > { %2077 = vmatpush3.bf16.msra.mxu1 %v2235_v38 }
 0x117   : > { %v2854_v2 = vsub.f32 %v2789_v10, %v455_v61  ;;  %507 = vadd.xlane.f32.xlu1 %v484_v57  ;;  %509 = vadd.xlane.f32.xlu0 %v485_v62  ;;  %v2857_v3 = vsub.f32 %v2792_v11, %v456_v63 }
 0x118   : > { %v437_v5 = vpop.xlane.xlu0 %436  ;;  %v439_v6 = vpop.xlane.xlu1 %438  ;;  %901 = vmatpush1.bf16.msra.mxu0 %v2228_v33  ;;  %2078 = vmatprep.subr.bf16.mxu1 %v2239_v43 }
 0x119   : > { %v457_v8 = vmul.f32 0.0078125, %v437_v5  ;;  %v487_v9 = vmul.f32 %v2854_v2, %v2854_v2  ;;  %v458_v16 = vmul.f32 0.0078125, %v439_v6  ;;  %v488_v17 = vmul.f32 %v2857_v3, %v2857_v3 }
 0x11a   : > { %2079 = vmatpush3.bf16.msra.mxu1 %v2239_v43 }
 0x11b   : > { %v2864_v10 = vsub.f32 %v2797_v12, %v457_v8  ;;  %511 = vadd.xlane.f32.xlu1 %v486_v4  ;;  %513 = vadd.xlane.f32.xlu0 %v487_v9  ;;  %v2867_v11 = vsub.f32 %v2800_v13, %v458_v16 }
 0x11c   : > { %v441_v20 = vpop.xlane.xlu0 %440  ;;  %v443_v21 = vpop.xlane.xlu1 %442  ;;  %2080 = vmatprep.subr.bf16.mxu1 %v2241_v45 }
 0x11d   : > { %v459_v23 = vmul.f32 0.0078125, %v441_v20  ;;  %v489_v26 = vmul.f32 %v2864_v10, %v2864_v10  ;;  %v460_v27 = vmul.f32 0.0078125, %v443_v21  ;;  %v490_v28 = vmul.f32 %v2867_v11, %v2867_v11 }
 0x11e   : > { %2081 = vmatpush3.bf16.msra.mxu1 %v2241_v45 }
 0x11f   : > { %v2874_v12 = vsub.f32 %v2805_v14, %v459_v23  ;;  %515 = vadd.xlane.f32.xlu1 %v488_v17  ;;  %517 = vadd.xlane.f32.xlu0 %v489_v26  ;;  %v2877_v13 = vsub.f32 %v2808_v15, %v460_v27  ;;  %v2229_v15 = vld [vmem:[#allocation5 + $0x7c] ss:$12 sps:$4 sm:$0xff]  }
 0x120   : > { %902 = vmatprep.subr.bf16.mxu0 %v2229_v15  ;;  %v2897_v15 = vld [vmem:[%s3237_s2] ss:$0 sm:$0xff] }
 0x121   : > { %v491_v34 = vmul.f32 %v2874_v12, %v2874_v12  ;;  %v492_v14 = vmul.f32 %v2877_v13, %v2877_v13  ;;  %903 = vmatpush1.bf16.msra.mxu0 %v2232_v36 }
 0x122   : > { %904 = vmatprep.subr.bf16.mxu0 %v2233_v37 }
 0x123   : > { %519 = vadd.xlane.f32.xlu1 %v490_v28  ;;  %521 = vadd.xlane.f32.xlu0 %v491_v34 }
 0x125   : > { %905 = vmatpush1.bf16.msra.mxu0 %v2236_v41 }
 0x126   : > { %906 = vmatprep.subr.bf16.mxu0 %v2237_v42 }
 0x127   : > { %523 = vadd.xlane.f32.xlu1 %v492_v14 }
 0x129   : > { %907 = vmatpush1.bf16.msra.mxu0 %v2240_v44 }
 0x194   : > { %v494_v49 = vpop.xlane.xlu0 %493 }
 0x195   : > { %v525_v50 = vmul.f32 0.0078125, %v494_v49 }
 0x197   : > { %v541_v51 = vadd.f32 1e-05, %v525_v50 }
 0x198   : > { %v496_v52 = vpop.xlane.xlu1 %495  ;;  %v498_v53 = vpop.xlane.xlu0 %497 }
 0x199   : > { %2242 = vrsqrt.f32 %v541_v51  ;;  %v526_v54 = vmul.f32 0.0078125, %v496_v52  ;;  %v527_v57 = vmul.f32 0.0078125, %v498_v53 }
 0x19b   : > { %v542_v58 = vadd.f32 1e-05, %v526_v54  ;;  %v543_v59 = vadd.f32 1e-05, %v527_v57 }
 0x19c   : > { %v500_v60 = vpop.xlane.xlu1 %499  ;;  %v502_v61 = vpop.xlane.xlu0 %501 }
 0x19d   : > { %2244 = vrsqrt.f32 %v542_v58  ;;  %v528_v62 = vmul.f32 0.0078125, %v500_v60  ;;  %v529_v63 = vmul.f32 0.0078125, %v502_v61 }
 0x19e   : > { %2246 = vrsqrt.f32 %v543_v59 }
 0x19f   : > { %v544_v0 = vadd.f32 1e-05, %v528_v62  ;;  %v545_v1 = vadd.f32 1e-05, %v529_v63 }
 0x1a0   : > { %v504_v4 = vpop.xlane.xlu1 %503  ;;  %v506_v5 = vpop.xlane.xlu0 %505 }
 0x1a1   : > { %2248 = vrsqrt.f32 %v544_v0  ;;  %v530_v6 = vmul.f32 0.0078125, %v504_v4  ;;  %v531_v7 = vmul.f32 0.0078125, %v506_v5 }
 0x1a2   : > { %2250 = vrsqrt.f32 %v545_v1 }
 0x1a3   : > { %v2243_v8 = vpop.eup %2242  ;;  %v546_v9 = vadd.f32 1e-05, %v530_v6  ;;  %v547_v16 = vadd.f32 1e-05, %v531_v7 }
 0x1a4   : > { %v508_v17 = vpop.xlane.xlu1 %507  ;;  %v510_v18 = vpop.xlane.xlu0 %509  ;;  %v573_v19 = vmul.f32 %v2243_v8, %v2812_v24 }
 0x1a5   : > { %2252 = vrsqrt.f32 %v546_v9  ;;  %v532_v20 = vmul.f32 0.0078125, %v508_v17  ;;  %v533_v21 = vmul.f32 0.0078125, %v510_v18 }
 0x1a6   : > { %2254 = vrsqrt.f32 %v547_v16  ;;  %v596_v24 = vmul.f32 %v2890_v22, %v573_v19 }
 0x1a7   : > { %v2245_v23 = vpop.eup %2244  ;;  %v548_v26 = vadd.f32 1e-05, %v532_v20  ;;  %v549_v27 = vadd.f32 1e-05, %v533_v21 }
 0x1a8   : > { %v2247_v28 = vpop.eup %2246  ;;  %v512_v29 = vpop.xlane.xlu1 %511  ;;  %v574_v33 = vmul.f32 %v2245_v23, %v2818_v31  ;;  %v619_v45 = vadd.f32 %v2897_v15, %v596_v24 }
 0x1a9   : > { %v514_v30 = vpop.xlane.xlu0 %513  ;;  %2256 = vrsqrt.f32 %v548_v26  ;;  %v534_v34 = vmul.f32 0.0078125, %v512_v29  ;;  %v575_v35 = vmul.f32 %v2247_v28, %v2814_v25 }
 0x1aa   : > { %v535_v14 = vmul.f32 0.0078125, %v514_v30  ;;  %2258 = vrsqrt.f32 %v549_v27  ;;  %v597_v36 = vmul.f32 %v2890_v22, %v574_v33 }
 0x1ab   : > { %v2249_v37 = vpop.eup %2248  ;;  %v550_v38 = vadd.f32 1e-05, %v534_v34  ;;  %v598_v41 = vmul.f32 %v2890_v22, %v575_v35 }
 0x1ac   : > { %v551_v31 = vadd.f32 1e-05, %v535_v14  ;;  %v2251_v42 = vpop.eup %2250  ;;  %v516_v43 = vpop.xlane.xlu1 %515  ;;  %v620_v49 = vadd.f32 %v2897_v15, %v597_v36  ;;  %v576_v25 = vmul.f32 %v2249_v37, %v2820_v32 }
 0x1ad   : > { %v518_v44 = vpop.xlane.xlu0 %517  ;;  %2260 = vrsqrt.f32 %v550_v38  ;;  %v536_v50 = vmul.f32 0.0078125, %v516_v43  ;;  %v577_v54 = vmul.f32 %v2251_v42, %v2826_v39  ;;  %v621_v60 = vadd.f32 %v2897_v15, %v598_v41 }
 0x1ae   : > { %v537_v51 = vmul.f32 0.0078125, %v518_v44  ;;  %2262 = vrsqrt.f32 %v551_v31  ;;  %v635_v52 = vpack.c.bf16 %v620_v49, %v619_v45  ;;  %v599_v53 = vmul.f32 %v2890_v22, %v576_v25 }
 0x1af   : > { %v2253_v57 = vpop.eup %2252  ;;  %v552_v58 = vadd.f32 1e-05, %v536_v50  ;;  %v600_v39 = vmul.f32 %v2890_v22, %v577_v54 }
 0x1b0   : > { %v553_v59 = vadd.f32 1e-05, %v537_v51  ;;  %v2255_v61 = vpop.eup %2254  ;;  %v520_v62 = vpop.xlane.xlu1 %519  ;;  %1866 = vst [vmem:[%s2912_s3] sm:$0xff] %v635_v52   ;;  %925 = vmatmul.mubr.bf16.vlgmr.msra.gmra.mrb[0].mxu0 %v635_v52  ;;  %2082 = vmatprep.mubr.bf16.mxu1 %v635_v52  ;;  %v622_v63 = vadd.f32 %v2897_v15, %v599_v53  ;;  %v578_v0 = vmul.f32 %v2253_v57, %v2828_v40 }
 0x1b1   : > { %v522_v32 = vpop.xlane.xlu0 %521  ;;  %2264 = vrsqrt.f32 %v552_v58  ;;  %v538_v1 = vmul.f32 0.0078125, %v520_v62  ;;  %934 = vmatprep.mubr.bf16.mxu0 %v2534_v46  ;;  %v579_v5 = vmul.f32 %v2255_v61, %v2834_v47  ;;  %v623_v19 = vadd.f32 %v2897_v15, %v600_v39 }
 0x1b2   : > { %v539_v4 = vmul.f32 0.0078125, %v522_v32  ;;  %2266 = vrsqrt.f32 %v553_v59  ;;  %v636_v6 = vpack.c.bf16 %v622_v63, %v621_v60  ;;  %v601_v7 = vmul.f32 %v2890_v22, %v578_v0 }
 0x1b3   : > { %v2257_v8 = vpop.eup %2256  ;;  %v554_v9 = vadd.f32 1e-05, %v538_v1  ;;  %v602_v17 = vmul.f32 %v2890_v22, %v579_v5 }
 0x1b4   : > { %v555_v16 = vadd.f32 1e-05, %v539_v4  ;;  %v2259_v40 = vpop.eup %2258  ;;  %v524_v18 = vpop.xlane.xlu1 %523  ;;  %2022 = vst [vmem:[%s2912_s3 + $0x8] sm:$0xff] %v636_v6   ;;  %2083 = vmatmul.mubr.bf16.vlgmr.msra.gmra.mrb[0].mxu1 %v636_v6  ;;  %v624_v20 = vadd.f32 %v2897_v15, %v601_v7  ;;  %v580_v47 = vmul.f32 %v2257_v8, %v2837_v48 }
 0x1b5   : > { %2268 = vrsqrt.f32 %v554_v9  ;;  %v540_v21 = vmul.f32 0.0078125, %v524_v18  ;;  %v581_v23 = vmul.f32 %v2259_v40, %v2844_v55  ;;  %v625_v30 = vadd.f32 %v2897_v15, %v602_v17 }
 0x1b6   : > { %2270 = vrsqrt.f32 %v555_v16  ;;  %v637_v26 = vpack.c.bf16 %v624_v20, %v623_v19  ;;  %v603_v27 = vmul.f32 %v2890_v22, %v580_v47 }
 0x1b7   : > { %v2261_v28 = vpop.eup %2260  ;;  %v556_v29 = vadd.f32 1e-05, %v540_v21  ;;  %v604_v34 = vmul.f32 %v2890_v22, %v581_v23 }
 0x1b8   : > { %v2263_v33 = vpop.eup %2262  ;;  %935 = vmatmul.mubr.bf16.gmra.mrb[4].mxu0 %v636_v6  ;;  %2023 = vst [vmem:[%s2912_s3 + $0x10] sm:$0xff] %v637_v26   ;;  %2086 = vmatprep.mubr.bf16.mxu1 %v637_v26  ;;  %v626_v24 = vadd.f32 %v2897_v15, %v603_v27  ;;  %v582_v48 = vmul.f32 %v2261_v28, %v2847_v56 }
 0x1b9   : > { %2272 = vrsqrt.f32 %v556_v29  ;;  %944 = vmatprep.mubr.bf16.mxu0 %v2534_v46  ;;  %v583_v55 = vmul.f32 %v2263_v33, %v2854_v2  ;;  %v627_v31 = vadd.f32 %v2897_v15, %v604_v34 }
 0x1ba   : > { %v638_v14 = vpack.c.bf16 %v626_v24, %v625_v30  ;;  %v605_v35 = vmul.f32 %v2890_v22, %v582_v48 }
 0x1bb   : > { %v2265_v36 = vpop.eup %2264  ;;  %v606_v37 = vmul.f32 %v2890_v22, %v583_v55 }
 0x1bc   : > { %v2267_v38 = vpop.eup %2266  ;;  %2024 = vst [vmem:[%s2912_s3 + $0x18] sm:$0xff] %v638_v14   ;;  %2087 = vmatmul.mubr.bf16.gmra.mrb[4].mxu1 %v638_v14  ;;  %v628_v56 = vadd.f32 %v2897_v15, %v605_v35  ;;  %v584_v41 = vmul.f32 %v2265_v36, %v2857_v3 }
 0x1bd   : > { %v585_v42 = vmul.f32 %v2267_v38, %v2864_v10  ;;  %v629_v45 = vadd.f32 %v2897_v15, %v606_v37 }
 0x1be   : > { %v639_v43 = vpack.c.bf16 %v628_v56, %v627_v31  ;;  %v607_v2 = vmul.f32 %v2890_v22, %v584_v41 }
 0x1bf   : > { %v2269_v44 = vpop.eup %2268  ;;  %v608_v3 = vmul.f32 %v2890_v22, %v585_v42 }
 0x1c0   : > { %v2271_v49 = vpop.eup %2270  ;;  %945 = vmatmul.mubr.bf16.gmra.mrb[8].mxu0 %v637_v26  ;;  %2025 = vst [vmem:[%s2912_s3 + $0x20] sm:$0xff] %v639_v43   ;;  %2090 = vmatprep.mubr.bf16.mxu1 %v639_v43  ;;  %v630_v25 = vadd.f32 %v2897_v15, %v607_v2  ;;  %v586_v50 = vmul.f32 %v2269_v44, %v2867_v11 }
 0x1c1   : > { %954 = vmatprep.mubr.bf16.mxu0 %v2534_v46  ;;  %v587_v10 = vmul.f32 %v2271_v49, %v2874_v12  ;;  %v631_v54 = vadd.f32 %v2897_v15, %v608_v3 }
 0x1c2   : > { %v640_v51 = vpack.c.bf16 %v630_v25, %v629_v45  ;;  %v609_v52 = vmul.f32 %v2890_v22, %v586_v50 }
 0x1c3   : > { %v2273_v53 = vpop.eup %2272  ;;  %v610_v58 = vmul.f32 %v2890_v22, %v587_v10 }
 0x1c4   : > { %2026 = vst [vmem:[%s2912_s3 + $0x28] sm:$0xff] %v640_v51   ;;  %2091 = vmatmul.mubr.bf16.gmra.mrb[8].mxu1 %v640_v51  ;;  %v632_v57 = vadd.f32 %v2897_v15, %v609_v52  ;;  %v588_v11 = vmul.f32 %v2273_v53, %v2877_v13  ;;  %v749_v13 = vlaneseq }
 0x1c5   : > { %v633_v12 = vadd.f32 %v2897_v15, %v610_v58 }
 0x1c6   : > { %v641_v59 = vpack.c.bf16 %v632_v57, %v631_v54  ;;  %v611_v60 = vmul.f32 %v2890_v22, %v588_v11  ;;  %v750_v22 = vshrl.u32 %v749_v13, 7 }
 0x1c8   : > { %955 = vmatmul.mubr.bf16.gmra.mrb[12].mxu0 %v638_v14  ;;  %2027 = vst [vmem:[%s2912_s3 + $0x30] sm:$0xff] %v641_v59   ;;  %2094 = vmatprep.mubr.bf16.mxu1 %v641_v59  ;;  %v634_v61 = vadd.f32 %v2897_v15, %v611_v60  ;;  %v751_v32 = vsub.s32 0, %v750_v22  ;;  %v747_v15 = vld [vmem:[%s3239_s4] sm:$0x7]  ;;  %v755_v63 = vsub.s32 1, %v750_v22  ;;  %v759_v1 = vsub.s32 2, %v750_v22 }
 0x1c9   : > { %964 = vmatprep.mubr.bf16.mxu0 %v2534_v46 }
 0x1ca   : > { %v642_v62 = vpack.c.bf16 %v634_v61, %v633_v12  ;;  %v2968_v0 = vrot.slane %v747_v15, %v751_v32  ;;  %v2970_v39 = vrot.slane %v747_v15, %v755_v63  ;;  %v2975_v16 = vrot.slane %v747_v15, %v759_v1 }
 0x1cc   : > { %2028 = vst [vmem:[%s2912_s3 + $0x38] sm:$0xff] %v642_v62   ;;  %2095 = vmatmul.mubr.bf16.gmra.mrb[12].mxu1 %v642_v62 }
 0x1d0   : > { %965 = vmatmul.mubr.bf16.gmra.mrb[16].mxu0 %v639_v43 }
 0x1d1   : > { %974 = vmatprep.mubr.bf16.mxu0 %v2534_v46 }
 0x1d8   : > { %975 = vmatmul.mubr.bf16.gmra.mrb[20].mxu0 %v640_v51 }
 0x1d9   : > { %984 = vmatprep.mubr.bf16.mxu0 %v2534_v46 }
 0x1e0   : > { %985 = vmatmul.mubr.bf16.gmra.mrb[24].mxu0 %v641_v59 }
 0x1e1   : > { %994 = vmatprep.mubr.bf16.mxu0 %v2534_v46 }
 0x1e8   : > { %995 = vmatmul.mubr.bf16.gmra.mrb[28].mxu0 %v642_v62 }
 0x283   : > { %v926_v4 = vpop.f32.mrb[0].mxu0 }
 0x284   : > { %v927_v5 = vadd.f32 %v926_v4, %v2968_v0  ;;  %v928_v6 = vpop.f32.mrb[1].mxu0 }
 0x285   : > { %v929_v46 = vadd.f32 %v928_v6, %v2970_v39  ;;  %v930_v7 = vpop.f32.mrb[2].mxu0 }
 0x286   : > { %v931_v8 = vadd.f32 %v930_v7, %v2968_v0  ;;  %v932_v9 = vpop.f32.mrb[3].mxu0  ;;  %v1102_v40 = vmul.f32 0.088388346, %v927_v5 }
 0x287   : > { %1198 = vxpose.xlu0.b32.start [1/16] %v929_v46, 128  ;;  %v2084_v17 = vpop.f32.mrb[0].mxu1  ;;  %v933_v20 = vadd.f32 %v932_v9, %v2970_v39 }
 0x288   : > { %v1103_v18 = vmul.f32 0.088388346, %v931_v8  ;;  %v1039_v19 = vpop.f32.mrb[1].mxu1  ;;  %v1048_v23 = vadd.f32 %v2084_v17, %v2975_v16 }
 0x289   : > { %v2085_v47 = vpop.f32.mrb[2].mxu1  ;;  %v1040_v28 = vadd.f32 %v1039_v19, %v2975_v16 }
 0x28a   : > { %v1905_v21 = vpack.c.bf16 %v1103_v18, %v1102_v40  ;;  %v1051_v26 = vadd.f32 %v2085_v47, %v2975_v16  ;;  %v1042_v27 = vpop.f32.mrb[3].mxu1 }
 0x28b   : > { %v1043_v29 = vadd.f32 %v1042_v27, %v2975_v16  ;;  %1199 = vxpose.xlu0.b32.cont [2/16] %v933_v20, 128  ;;  %v936_v30 = vpop.f32.mrb[4].mxu0 }
 0x28c   : > { %1906 = vst [vmem:[%s2983_s26] sm:$0xff] %v1905_v21   ;;  %v1990_v33 = vpack.c.bf16 %v1051_v26, %v1048_v23  ;;  %v937_v24 = vadd.f32 %v936_v30, %v2968_v0  ;;  %v938_v48 = vpop.f32.mrb[5].mxu0 }
 0x28d   : > { %v1985_v34 = vpack.c.bf16 %v1043_v29, %v1040_v28  ;;  %v939_v55 = vadd.f32 %v938_v48, %v2970_v39  ;;  %v940_v14 = vpop.f32.mrb[6].mxu0 }
 0x28e   : > { %2043 = vst [vmem:[%s2989_s19 + $0x8] sm:$0xff] %v1990_v33   ;;  %v941_v35 = vadd.f32 %v940_v14, %v2968_v0  ;;  %v942_v36 = vpop.f32.mrb[7].mxu0  ;;  %v1104_v38 = vmul.f32 0.088388346, %v937_v24 }
 0x28f   : > { %1986 = vst [vmem:[%s2989_s19] sm:$0xff] %v1985_v34   ;;  %1200 = vxpose.xlu0.b32.cont [3/16] %v939_v55, 128  ;;  %v2088_v37 = vpop.f32.mrb[4].mxu1  ;;  %v943_v41 = vadd.f32 %v942_v36, %v2970_v39 }
 0x290   : > { %v1105_v31 = vmul.f32 0.088388346, %v941_v35  ;;  %v1055_v56 = vpop.f32.mrb[5].mxu1  ;;  %v1064_v2 = vadd.f32 %v2088_v37, %v2975_v16 }
 0x291   : > { %v2089_v42 = vpop.f32.mrb[6].mxu1  ;;  %v1056_v49 = vadd.f32 %v1055_v56, %v2975_v16 }
 0x292   : > { %v1910_v43 = vpack.c.bf16 %v1105_v31, %v1104_v38  ;;  %v1067_v44 = vadd.f32 %v2089_v42, %v2975_v16  ;;  %v1058_v45 = vpop.f32.mrb[7].mxu1 }
 0x293   : > { %v1059_v25 = vadd.f32 %v1058_v45, %v2975_v16  ;;  %1201 = vxpose.xlu0.b32.cont [4/16] %v943_v41, 128  ;;  %v946_v50 = vpop.f32.mrb[8].mxu0 }
 0x294   : > { %2029 = vst [vmem:[%s2983_s26 + $0x8] sm:$0xff] %v1910_v43   ;;  %v2000_v3 = vpack.c.bf16 %v1067_v44, %v1064_v2  ;;  %v947_v10 = vadd.f32 %v946_v50, %v2968_v0  ;;  %v948_v51 = vpop.f32.mrb[9].mxu0 }
 0x295   : > { %v1995_v52 = vpack.c.bf16 %v1059_v25, %v1056_v49  ;;  %v949_v53 = vadd.f32 %v948_v51, %v2970_v39  ;;  %v950_v54 = vpop.f32.mrb[10].mxu0 }
 0x296   : > { %2045 = vst [vmem:[%s2989_s19 + $0x18] sm:$0xff] %v2000_v3   ;;  %v951_v57 = vadd.f32 %v950_v54, %v2968_v0  ;;  %v952_v11 = vpop.f32.mrb[11].mxu0  ;;  %v1106_v59 = vmul.f32 0.088388346, %v947_v10 }
 0x297   : > { %2044 = vst [vmem:[%s2989_s19 + $0x10] sm:$0xff] %v1995_v52   ;;  %1202 = vxpose.xlu0.b32.cont [5/16] %v949_v53, 128  ;;  %v2092_v58 = vpop.f32.mrb[8].mxu1  ;;  %v953_v61 = vadd.f32 %v952_v11, %v2970_v39 }
 0x298   : > { %v1107_v60 = vmul.f32 0.088388346, %v951_v57  ;;  %v1071_v12 = vpop.f32.mrb[9].mxu1  ;;  %v1080_v22 = vadd.f32 %v2092_v58, %v2975_v16 }
 0x299   : > { %v2093_v62 = vpop.f32.mrb[10].mxu1  ;;  %v1072_v63 = vadd.f32 %v1071_v12, %v2975_v16 }
 0x29a   : > { %v1915_v13 = vpack.c.bf16 %v1107_v60, %v1106_v59  ;;  %v1083_v32 = vadd.f32 %v2093_v62, %v2975_v16  ;;  %v1074_v15 = vpop.f32.mrb[11].mxu1 }
 0x29b   : > { %v1075_v1 = vadd.f32 %v1074_v15, %v2975_v16  ;;  %1203 = vxpose.xlu0.b32.cont [6/16] %v953_v61, 128  ;;  %v956_v4 = vpop.f32.mrb[12].mxu0 }
 0x29c   : > { %2030 = vst [vmem:[%s2983_s26 + $0x10] sm:$0xff] %v1915_v13   ;;  %v2010_v5 = vpack.c.bf16 %v1083_v32, %v1080_v22  ;;  %v957_v6 = vadd.f32 %v956_v4, %v2968_v0  ;;  %v958_v46 = vpop.f32.mrb[13].mxu0 }
 0x29d   : > { %v2005_v7 = vpack.c.bf16 %v1075_v1, %v1072_v63  ;;  %v959_v8 = vadd.f32 %v958_v46, %v2970_v39  ;;  %v960_v9 = vpop.f32.mrb[14].mxu0 }
 0x29e   : > { %2047 = vst [vmem:[%s2989_s19 + $0x28] sm:$0xff] %v2010_v5   ;;  %v961_v17 = vadd.f32 %v960_v9, %v2968_v0  ;;  %v962_v40 = vpop.f32.mrb[15].mxu0  ;;  %v1108_v19 = vmul.f32 0.088388346, %v957_v6 }
 0x29f   : > { %2046 = vst [vmem:[%s2989_s19 + $0x20] sm:$0xff] %v2005_v7   ;;  %1204 = vxpose.xlu0.b32.cont [7/16] %v959_v8, 128  ;;  %v2096_v18 = vpop.f32.mrb[12].mxu1  ;;  %v963_v21 = vadd.f32 %v962_v40, %v2970_v39 }
 0x2a0   : > { %v1109_v20 = vmul.f32 0.088388346, %v961_v17  ;;  %v1087_v47 = vpop.f32.mrb[13].mxu1  ;;  %v1096_v27 = vadd.f32 %v2096_v18, %v2975_v16 }
 0x2a1   : > { %v2097_v23 = vpop.f32.mrb[14].mxu1  ;;  %v1088_v30 = vadd.f32 %v1087_v47, %v2975_v16 }
 0x2a2   : > { %v1920_v26 = vpack.c.bf16 %v1109_v20, %v1108_v19  ;;  %v1099_v28 = vadd.f32 %v2097_v23, %v2975_v16  ;;  %v1090_v29 = vpop.f32.mrb[15].mxu1 }
 0x2a3   : > { %v1091_v33 = vadd.f32 %v1090_v29, %v2975_v16  ;;  %1205 = vxpose.xlu0.b32.cont [8/16] %v963_v21, 128  ;;  %v966_v24 = vpop.f32.mrb[16].mxu0 }
 0x2a4   : > { %2031 = vst [vmem:[%s2983_s26 + $0x18] sm:$0xff] %v1920_v26   ;;  %v2020_v48 = vpack.c.bf16 %v1099_v28, %v1096_v27  ;;  %v967_v34 = vadd.f32 %v966_v24, %v2968_v0  ;;  %v968_v55 = vpop.f32.mrb[17].mxu0 }
 0x2a5   : > { %v2015_v14 = vpack.c.bf16 %v1091_v33, %v1088_v30  ;;  %v969_v35 = vadd.f32 %v968_v55, %v2970_v39  ;;  %v970_v36 = vpop.f32.mrb[18].mxu0 }
 0x2a6   : > { %2049 = vst [vmem:[%s2989_s19 + $0x38] sm:$0xff] %v2020_v48   ;;  %v971_v37 = vadd.f32 %v970_v36, %v2968_v0  ;;  %v972_v38 = vpop.f32.mrb[19].mxu0  ;;  %v1110_v31 = vmul.f32 0.088388346, %v967_v34 }
 0x2a7   : > { %2048 = vst [vmem:[%s2989_s19 + $0x30] sm:$0xff] %v2015_v14   ;;  %1206 = vxpose.xlu0.b32.cont [9/16] %v969_v35, 128  ;;  %v973_v56 = vadd.f32 %v972_v38, %v2970_v39 }
 0x2a8   : > { %v1111_v16 = vmul.f32 0.088388346, %v971_v37 }
 0x2aa   : > { %v1925_v41 = vpack.c.bf16 %v1111_v16, %v1110_v31 }
 0x2ab   : > { %1207 = vxpose.xlu0.b32.cont [10/16] %v973_v56, 128  ;;  %v976_v42 = vpop.f32.mrb[20].mxu0 }
 0x2ac   : > { %2032 = vst [vmem:[%s2983_s26 + $0x20] sm:$0xff] %v1925_v41   ;;  %v977_v43 = vadd.f32 %v976_v42, %v2968_v0  ;;  %v978_v2 = vpop.f32.mrb[21].mxu0 }
 0x2ad   : > { %v979_v44 = vadd.f32 %v978_v2, %v2970_v39  ;;  %v980_v45 = vpop.f32.mrb[22].mxu0 }
 0x2ae   : > { %v981_v49 = vadd.f32 %v980_v45, %v2968_v0  ;;  %v982_v25 = vpop.f32.mrb[23].mxu0  ;;  %v1112_v50 = vmul.f32 0.088388346, %v977_v43 }
 0x2af   : > { %1208 = vxpose.xlu0.b32.cont [11/16] %v979_v44, 128  ;;  %v983_v10 = vadd.f32 %v982_v25, %v2970_v39 }
 0x2b0   : > { %v1113_v3 = vmul.f32 0.088388346, %v981_v49 }
 0x2b2   : > { %v1930_v51 = vpack.c.bf16 %v1113_v3, %v1112_v50 }
 0x2b3   : > { %1209 = vxpose.xlu0.b32.cont [12/16] %v983_v10, 128  ;;  %v986_v52 = vpop.f32.mrb[24].mxu0 }
 0x2b4   : > { %2033 = vst [vmem:[%s2983_s26 + $0x28] sm:$0xff] %v1930_v51   ;;  %v987_v53 = vadd.f32 %v986_v52, %v2968_v0  ;;  %v988_v54 = vpop.f32.mrb[25].mxu0 }
 0x2b5   : > { %v989_v57 = vadd.f32 %v988_v54, %v2970_v39  ;;  %v990_v11 = vpop.f32.mrb[26].mxu0 }
 0x2b6   : > { %v991_v58 = vadd.f32 %v990_v11, %v2968_v0  ;;  %v992_v59 = vpop.f32.mrb[27].mxu0  ;;  %v1114_v60 = vmul.f32 0.088388346, %v987_v53 }
 0x2b7   : > { %1210 = vxpose.xlu0.b32.cont [13/16] %v989_v57, 128  ;;  %v993_v61 = vadd.f32 %v992_v59, %v2970_v39 }
 0x2b8   : > { %v1115_v12 = vmul.f32 0.088388346, %v991_v58 }
 0x2ba   : > { %v1935_v62 = vpack.c.bf16 %v1115_v12, %v1114_v60 }
 0x2bb   : > { %1211 = vxpose.xlu0.b32.cont [14/16] %v993_v61, 128  ;;  %v996_v13 = vpop.f32.mrb[28].mxu0 }
 0x2bc   : > { %2034 = vst [vmem:[%s2983_s26 + $0x30] sm:$0xff] %v1935_v62   ;;  %v997_v22 = vadd.f32 %v996_v13, %v2968_v0  ;;  %v998_v32 = vpop.f32.mrb[29].mxu0 }
 0x2bd   : > { %v999_v15 = vadd.f32 %v998_v32, %v2970_v39  ;;  %v1000_v63 = vpop.f32.mrb[30].mxu0 }
 0x2be   : > { %v1001_v1 = vadd.f32 %v1000_v63, %v2968_v0  ;;  %v1002_v4 = vpop.f32.mrb[31].mxu0  ;;  %v1116_v5 = vmul.f32 0.088388346, %v997_v22 }
 0x2bf   : > { %1212 = vxpose.xlu0.b32.cont [15/16] %v999_v15, 128  ;;  %v1003_v46 = vadd.f32 %v1002_v4, %v2970_v39 }
 0x2c0   : > { %v1117_v6 = vmul.f32 0.088388346, %v1001_v1 }
 0x2c2   : > { %v1940_v7 = vpack.c.bf16 %v1117_v6, %v1116_v5 }
 0x2c3   : > { %1213 = vxpose.xlu0.b32.end [16/16] %v1003_v46, 128 }
 0x2c4   : > { %2035 = vst [vmem:[%s2983_s26 + $0x38] sm:$0xff] %v1940_v7   ;;  %s2535_s26 = smov [#allocation8]  }
 0x2c5   : > { %s2336_s0 = sshll.u32 %s2535_s26, 4  ;;  %s2337_s0 = int_to_ptr.vmem [resolvable:$false] %s2336_s0 }
 0x2c6   : > { %s2338_s22 = scalar_lea.vmem %s2337_s0, 2048  ;;  %p2339_p13 = scmp.lt.s32.totalorder %s3047_s21, %s2337_s0 }
 0x2c7   : > { %p2340_p3 = scmp.lt.s32.totalorder %s2338_s22, %s2332_s25 }
 0x2c9   : > { %p2341_p7 = por %p2340_p3, %p2339_p13 }
 0x2cb   : > { %p2342_p1 = pnand %p2341_p7, %p2335_p12 }
 0x2cd   : > { %2345 = shalt.err (!%p2342_p1)
}
 0x2ce   : > { %s2346_s13 = scalar_lea.hbm %s3058_s17, 1024  ;;  %s2350_s14 = scalar_lea.hbm %s3286_s15, 4096 }
 0x2cf   : > { %p2347_p2 = scmp.ne.s32.totalorder %s3058_s17, %s2346_s13  ;;  %p2351_p9 = scmp.lt.u32.totalorder %s3058_s17, %s3286_s15 }
 0x2d0   : > { %p2352_p0 = scmp.lt.u32.totalorder %s2350_s14, %s2346_s13  ;;  %p2354_p8 = scmp.lt.u32.totalorder %s2346_s13, %s3058_s17 }
 0x2d1   : > { %p2348_p4 = pnand %p2347_p2, %p2690_p11 }
 0x2d2   : > { %p2353_p6 = por %p2352_p0, %p2351_p9 }
 0x2d3   : > { %p2349_p5 = pneg %p2348_p4 }
 0x2d4   : > { %p2355_p10 = por %p2354_p8, %p2353_p6 }
 0x2d6   : > { %p2356_p12 = pnand %p2355_p10, %p2349_p5 }
 0x2d8   : > { %2359 = shalt.err (!%p2356_p12)
}
 0x2d9   : > { %s2536_s27 = smov 64   ;;  %s2537_s25 = smov 4  }
 0x2da   : > { %2105 = dma.vmem_to_hbm [thread:$0]  (%p2690_p11), %s3047_s21, 1024, %s3058_s17, %s3060_s5, %s2536_s27, %s2536_s27, %s2537_s25  }
 0x2db   : > { %s1474_s26 = sshll.u32 %s2989_s19, 4  ;;  %s3287_s24 = sld [smem:[#allocation26_spill]]  ;;  %s3095_s26 = int_to_ptr.vmem [resolvable:$true] %s1474_s26 }
 0x2dc   : > { %s1421_s14 = sshll.u32 %s2912_s3, 4  ;;  %s1391_s6 = scalar_lea.sflag [#allocation4], %s2755_s8  ;;  %s3097_s14 = int_to_ptr.vmem [resolvable:$true] %s1421_s14 }
 0x2dd   : > { %s2360_s0 = scalar_lea.vmem %s3097_s14, 1024  ;;  %s2538_s19 = smov [#allocation7]  }
 0x2de   : > { %p2361_p13 = scmp.ne.s32.totalorder %s3097_s14, %s2360_s0  ;;  %s2364_s21 = sshll.u32 %s2538_s19, 4  ;;  %s2365_s21 = int_to_ptr.vmem [resolvable:$false] %s2364_s21 }
 0x2df   : > { %s2366_s17 = scalar_lea.vmem %s2365_s21, 2048  ;;  %p2367_p1 = scmp.lt.s32.totalorder %s3097_s14, %s2365_s21 }
 0x2e0   : > { %p2362_p3 = pnand %p2361_p13, %p2690_p11  ;;  %p2368_p2 = scmp.lt.s32.totalorder %s2366_s17, %s2360_s0 }
 0x2e1   : > { %s3092_s16 = scalar_lea.hbm %s3287_s24, %s3052_s10 }
 0x2e2   : > { %p2363_p7 = pneg %p2362_p3  ;;  %p2369_p4 = por %p2368_p2, %p2367_p1 }
 0x2e4   : > { %p2370_p5 = pnand %p2369_p4, %p2363_p7 }
 0x2e6   : > { %2373 = shalt.err (!%p2370_p5)
}
 0x2e7   : > { %s2374_s3 = scalar_lea.hbm %s3092_s16, 1024  ;;  %s2378_s19 = scalar_lea.hbm %s3287_s24, 4096 }
 0x2e8   : > { %p2375_p9 = scmp.ne.s32.totalorder %s3092_s16, %s2374_s3  ;;  %p2379_p8 = scmp.lt.u32.totalorder %s3092_s16, %s3287_s24 }
 0x2e9   : > { %p2380_p10 = scmp.lt.u32.totalorder %s2378_s19, %s2374_s3  ;;  %p2382_p13 = scmp.lt.u32.totalorder %s2374_s3, %s3092_s16 }
 0x2ea   : > { %p2376_p0 = pnand %p2375_p9, %p2690_p11 }
 0x2eb   : > { %p2381_p12 = por %p2380_p10, %p2379_p8 }
 0x2ec   : > { %p2377_p6 = pneg %p2376_p0 }
 0x2ed   : > { %p2383_p3 = por %p2382_p13, %p2381_p12 }
 0x2ef   : > { %p2384_p7 = pnand %p2383_p3, %p2377_p6 }
 0x2f1   : > { %2387 = shalt.err (!%p2384_p7)
}
 0x2f2   : > { %2104 = dma.vmem_to_hbm [thread:$0]  (%p2690_p11), %s3097_s14, 1024, %s3092_s16, %s1391_s6, %s2536_s27, %s2536_s27, %s2537_s25  }
 0x2f3   : > { %s3288_s17 = sld [smem:[#allocation29_spill]]  ;;  %s1406_s22 = scalar_lea.sflag [#allocation12], %s2755_s8 }
 0x2f4   : > { %s2388_s13 = scalar_lea.vmem %s3095_s26, 1024  ;;  %s2539_s19 = smov [#allocation11]  }
 0x2f5   : > { %p2389_p1 = scmp.ne.s32.totalorder %s3095_s26, %s2388_s13  ;;  %s2392_s21 = sshll.u32 %s2539_s19, 4  ;;  %s2393_s21 = int_to_ptr.vmem [resolvable:$false] %s2392_s21 }
 0x2f6   : > { %s2394_s1 = scalar_lea.vmem %s2393_s21, 2048  ;;  %p2395_p5 = scmp.lt.s32.totalorder %s3095_s26, %s2393_s21 }
 0x2f7   : > { %p2390_p2 = pnand %p2389_p1, %p2690_p11  ;;  %p2396_p9 = scmp.lt.s32.totalorder %s2394_s1, %s2388_s13 }
 0x2f9   : > { %s3130_s3 = scalar_lea.hbm %s3288_s17, %s3052_s10  ;;  %p2391_p4 = pneg %p2390_p2 }
 0x2fa   : > { %p2397_p0 = por %p2396_p9, %p2395_p5 }
 0x2fc   : > { %p2398_p6 = pnand %p2397_p0, %p2391_p4 }
 0x2fe   : > { %2401 = shalt.err (!%p2398_p6)
}
 0x2ff   : > { %s2402_s10 = scalar_lea.hbm %s3130_s3, 1024  ;;  %s2406_s6 = scalar_lea.hbm %s3288_s17, 4096 }
 0x300   : > { %p2403_p8 = scmp.ne.s32.totalorder %s3130_s3, %s2402_s10  ;;  %p2407_p13 = scmp.lt.u32.totalorder %s3130_s3, %s3288_s17 }
 0x301   : > { %p2408_p3 = scmp.lt.u32.totalorder %s2406_s6, %s2402_s10  ;;  %p2410_p1 = scmp.lt.u32.totalorder %s2402_s10, %s3130_s3 }
 0x302   : > { %p2404_p10 = pnand %p2403_p8, %p2690_p11 }
 0x303   : > { %p2409_p7 = por %p2408_p3, %p2407_p13 }
 0x304   : > { %p2405_p12 = pneg %p2404_p10 }
 0x305   : > { %p2411_p2 = por %p2410_p1, %p2409_p7 }
 0x307   : > { %p2412_p4 = pnand %p2411_p2, %p2405_p12 }
 0x309   : > { %2415 = shalt.err (!%p2412_p4)
}
 0x30a   : > { %2107 = dma.vmem_to_hbm [thread:$0]  (%p2690_p11), %s3095_s26, 1024, %s3130_s3, %s1406_s22, %s2536_s27, %s2536_s27, %s2537_s25   ;;  %v1214_v0 = vpop.trf.xlu0 }
 0x30b   : > { %s3160_s1 = scalar_lea.vmem [#allocation10], %s2901_s18  ;;  %s3289_s8 = sshll.u32 %s2514_s9, 5 }
 0x30c   : > { %s1453_s18 = sadd.s32 %s2510_s30, %s3289_s8  ;;  %s1456_s26 = sshll.u32 %s3160_s1, 4  ;;  %s3173_s26 = int_to_ptr.vmem [resolvable:$true] %s1456_s26 }
 0x30d   : > { %s1792_s3 = sshll.u32 %s1453_s18, 6  ;;  %s3290_s19 = sld [smem:[#allocation28_spill]] }
 0x30e   : > { %v1215_v39 = vpop.trf.xlu0  ;;  %s2416_s10 = scalar_lea.vmem %s3173_s26, 1024  ;;  %s2540_s30 = smov [#allocation10]  }
 0x30f   : > { %v1945_v8 = vpack.c.bf16 %v1215_v39, %v1214_v0  ;;  %p2417_p5 = scmp.ne.s32.totalorder %s3173_s26, %s2416_s10  ;;  %s2420_s9 = sshll.u32 %s2540_s30, 4  ;;  %s2421_s9 = int_to_ptr.vmem [resolvable:$false] %s2420_s9 }
 0x310   : > { %s2422_s16 = scalar_lea.vmem %s2421_s9, 2048  ;;  %p2423_p6 = scmp.lt.s32.totalorder %s3173_s26, %s2421_s9 }
 0x311   : > { %1946 = vst [vmem:[%s3160_s1] sm:$0xff] %v1945_v8   ;;  %p2418_p9 = pnand %p2417_p5, %p2690_p11  ;;  %p2424_p8 = scmp.lt.s32.totalorder %s2422_s16, %s2416_s10 }
 0x312   : > { %v1216_v9 = vpop.trf.xlu0 }
 0x313   : > { %s3178_s21 = scalar_lea.hbm %s3290_s19, %s1792_s3  ;;  %p2419_p0 = pneg %p2418_p9 }
 0x314   : > { %p2425_p10 = por %p2424_p8, %p2423_p6 }
 0x316   : > { %v1217_v17 = vpop.trf.xlu0  ;;  %p2426_p12 = pnand %p2425_p10, %p2419_p0 }
 0x317   : > { %v1950_v40 = vpack.c.bf16 %v1217_v17, %v1216_v9 }
 0x319   : > { %2036 = vst [vmem:[%s3160_s1 + $0x8] sm:$0xff] %v1950_v40  }
 0x31a   : > { %v1218_v18 = vpop.trf.xlu0 }
 0x31e   : > { %v1219_v19 = vpop.trf.xlu0 }
 0x31f   : > { %v1955_v20 = vpack.c.bf16 %v1219_v19, %v1218_v18 }
 0x321   : > { %2037 = vst [vmem:[%s3160_s1 + $0x10] sm:$0xff] %v1955_v20  }
 0x322   : > { %v1220_v47 = vpop.trf.xlu0 }
 0x326   : > { %v1221_v21 = vpop.trf.xlu0 }
 0x327   : > { %v1960_v23 = vpack.c.bf16 %v1221_v21, %v1220_v47 }
 0x329   : > { %2038 = vst [vmem:[%s3160_s1 + $0x18] sm:$0xff] %v1960_v23  }
 0x32a   : > { %v1222_v26 = vpop.trf.xlu0 }
 0x32e   : > { %v1223_v27 = vpop.trf.xlu0 }
 0x32f   : > { %v1965_v28 = vpack.c.bf16 %v1223_v27, %v1222_v26 }
 0x331   : > { %2039 = vst [vmem:[%s3160_s1 + $0x20] sm:$0xff] %v1965_v28  }
 0x332   : > { %v1224_v29 = vpop.trf.xlu0 }
 0x336   : > { %v1225_v30 = vpop.trf.xlu0 }
 0x337   : > { %v1970_v33 = vpack.c.bf16 %v1225_v30, %v1224_v29 }
 0x339   : > { %2040 = vst [vmem:[%s3160_s1 + $0x28] sm:$0xff] %v1970_v33  }
 0x33a   : > { %v1226_v24 = vpop.trf.xlu0 }
 0x33e   : > { %v1227_v48 = vpop.trf.xlu0 }
 0x33f   : > { %v1975_v34 = vpack.c.bf16 %v1227_v48, %v1226_v24 }
 0x341   : > { %2041 = vst [vmem:[%s3160_s1 + $0x30] sm:$0xff] %v1975_v34  }
 0x342   : > { %v1228_v55 = vpop.trf.xlu0 }
 0x346   : > { %v1229_v14 = vpop.trf.xlu0 }
 0x347   : > { %v1980_v35 = vpack.c.bf16 %v1229_v14, %v1228_v55 }
 0x349   : > { %2042 = vst [vmem:[%s3160_s1 + $0x38] sm:$0xff] %v1980_v35  }
 0x34a   : > { %2429 = shalt.err (!%p2426_p12)
}
 0x34b   : > { %s2430_s14 = scalar_lea.hbm %s3178_s21, 1024  ;;  %s2434_s0 = scalar_lea.hbm %s3290_s19, 4096 }
 0x34c   : > { %p2431_p13 = scmp.ne.s32.totalorder %s3178_s21, %s2430_s14  ;;  %p2435_p1 = scmp.lt.u32.totalorder %s3178_s21, %s3290_s19 }
 0x34d   : > { %p2436_p2 = scmp.lt.u32.totalorder %s2434_s0, %s2430_s14  ;;  %p2438_p5 = scmp.lt.u32.totalorder %s2430_s14, %s3178_s21 }
 0x34e   : > { %p2432_p3 = pnand %p2431_p13, %p2690_p11 }
 0x34f   : > { %p2437_p4 = por %p2436_p2, %p2435_p1 }
 0x350   : > { %p2433_p7 = pneg %p2432_p3 }
 0x351   : > { %p2439_p9 = por %p2438_p5, %p2437_p4 }
 0x353   : > { %p2440_p0 = pnand %p2439_p9, %p2433_p7 }
 0x355   : > { %2443 = shalt.err (!%p2440_p0)
}
 0x356   : > { %s2541_s18 = smov 128  }
 0x357   : > { %2106 = dma.vmem_to_hbm [thread:$0]  (%p2690_p11), %s3173_s26, 1024, %s3178_s21, %s3060_s5, %s2536_s27, %s2541_s18, %s2537_s25  }
 0x358 PF: > { %s3291_s3 = sld [smem:[#allocation18_spill]]  ;;  %s3292_s22 = sld [smem:[#allocation20_spill]] }
 0x359   : > { %p2136_p6 = scmp.ge.s32.totalorder %s2526_s12, 2 }
 0x35e   : > { %s1489_s13 = sand.u32 1, %s3291_s3   ;;  %p3293_p8 = scmp.ne.s32.totalorder %s3292_s22, 0 }
 0x35f   : > { %s1490_s10 = scalar_lea.sflag [#allocation4], %s1489_s13 }
 0x360   : > { %p2121_p10 = pnand %p2136_p6, %p3293_p8 }
 0x362   : > { %2485 = dma.done.wait (!%p2121_p10), %s1490_s10, 1024  }
 0x363   : > { %2487 = vsyncadd (!%p2121_p10), %s1490_s10, 4294966272  ;;  %s3294_s30 = sadd.s32 4294967294, %s2526_s12  }
 0x364   : > { %s1498_s20 = sand.u32 1, %s3294_s30  }
 0x365   : > { %s1499_s9 = scalar_lea.sflag [#allocation9], %s1498_s20 }
 0x366   : > { %2489 = dma.done.wait (!%p2121_p10), %s1499_s9, 2048  }
 0x367   : > { %2491 = vsyncadd (!%p2121_p10), %s1499_s9, 4294965248  ;;  %s1517_s16 = scalar_lea.sflag [#allocation12], %s1489_s13 }
 0x368   : > { %2493 = dma.done.wait (!%p2121_p10), %s1517_s16, 1024  }
 0x369   : > { %2495 = vsyncadd (!%p2121_p10), %s1517_s16, 4294966272  ;;  %s32_s12 = sadd.s32 1, %s2526_s12   ;;  %s3295_s30 = sld [smem:[#allocation19_spill]] }
 0x36a   : > { %p29_p11 = scmp.ge.s32.totalorder %s32_s12, 6   ;;  %s3296_s10 = sld [smem:[#allocation21_spill]] }
 0x36b   : > { %s3297_s5 = sld [smem:[#allocation22_spill]]  ;;  %s3298_s27 = smov %s2502_s28 }
 0x36c   : > { %s3299_s28 = smov %s2506_s29  ;;  %s3300_s29 = smov %s2707_s7 }
 0x36d   : > { %s3301_s9 = smov %s2522_s11  ;;  %31 = sbr.rel (!%p29_p11) target bundleno = 20 (0x14), region = 138 }
 0x371   : > { %s3302_s11 = smov %s3297_s5 }
 0x374   :  { %1522 = vsyncpa [#allocation3], 1 }
 0x375   :  { %1524 = vsyncpa [#allocation3 + $0x1], 1 }
 0x376   :  { %1525 = vsyncpa [#allocation6], 1 }
 0x377   :  { %1526 = vsyncpa [#allocation4], 1 }
 0x378   :  { %1528 = vsyncpa [#allocation4 + $0x1], 1 }
 0x379   :  { %1529 = vsyncpa [#allocation9], 1 }
 0x37a   :  { %1531 = vsyncpa [#allocation9 + $0x1], 1 }
 0x37b   :  { %1532 = vsyncpa [#allocation12], 1 }
 0x37c   :  { %1534 = vsyncpa [#allocation12 + $0x1], 1 }

</bundles_post_ra>
